<compile_context>
chip_gen: v7x
topology: tpu7x:2x2x1
jax: 0.10.0
libtpu: 0.0.40
codegen_flags: <defaults>
</compile_context>

<pallas_src>
import functools

import jax
import jax.numpy as jnp
from jax.experimental import pallas as pl
from jax.experimental.pallas import tpu as pltpu


# ----------------------------------------------------------------------------
# Small helpers
# ----------------------------------------------------------------------------
def _round_up(x, mult):
    return (x + mult - 1) // mult * mult


def _row_tile(m, cap=512, min_steps=4):
    """Row tile: multiple of 8, <= cap, small enough for >= min_steps grid steps
    (pipeline overlap + sharding across the two v7x TensorCores)."""
    tm = _round_up(max(pl.cdiv(m, min_steps), 8), 8)
    tm = min(tm, cap, _round_up(m, 8))
    return max(tm, 8)


def _resident_spec(shape):
    """BlockSpec for a grid-invariant operand (weights / biases): constant
    index_map, single-buffered so it is not pointlessly double-buffered."""
    ndim = len(shape)

    def index_map(i):
        return (0,) * ndim

    try:
        return pl.BlockSpec(shape, index_map, pipeline_mode=pl.Buffered(1))
    except (AttributeError, TypeError):   # very old jax: fall back to default
        return pl.BlockSpec(shape, index_map)


def _vmem_limit(est_bytes):
    # 2x headroom over the static estimate; never below the 32 MiB scoped
    # default, never above 64 MiB (v7x has only 64 MiB physical VMEM per core).
    return int(min(max(2 * est_bytes, 32 * 1024 * 1024), 64 * 1024 * 1024))


# ----------------------------------------------------------------------------
# Pallas kernels
# ----------------------------------------------------------------------------
def _spectral_mlp_kernel(xr_ref, xi_ref,
                         w1r_ref, w1i_ref, w1s_ref, w2r_ref, w2i_ref,
                         b1r_ref, b1i_ref, b2r_ref, b2i_ref,
                         o_ref):
    """Block-diagonal complex 2-layer MLP on rFFT coefficients.

    Weights are (nb, cp, cp), lane-padded per block; activations are
    (tm, nb*cp) with each block in its own lane-aligned slab of width cp.
    Matmul inputs are in the compute dtype (bf16 by default); accumulation,
    biases and elementwise math are f32.

    Mirrors the PyTorch code exactly, including the aliasing where the second
    layer's imaginary output is computed from the *already updated* real
    output (`x_real = ...; x_imag = mul(x_real, ...)` in the reference).
    """
    nb, cp, _ = w1r_ref.shape
    ctot = nb * cp
    cdt = xr_ref.dtype
    dot = functools.partial(jnp.dot, preferred_element_type=jnp.float32)

    for b in range(nb):                      # nb == 2: static unroll
        sl = slice(b * cp, (b + 1) * cp)
        xr = xr_ref[:, sl]
        xi = xi_ref[:, sl]

        # ---- layer 1: Karatsuba complex matmul (3 matmuls instead of 4) ----
        t1 = dot(xr, w1r_ref[b])
        t2 = dot(xi, w1i_ref[b])
        t3 = dot((xr + xi).astype(cdt), w1s_ref[b])     # w1s = w1r + w1i
        h_r = jnp.maximum(t1 - t2 + b1r_ref[b], 0.0)
        h_i = jnp.maximum(t3 - t1 - t2 + b1i_ref[b], 0.0)

        # ---- layer 2: keeps 4 matmuls because of the reference aliasing ----
        h_r_c = h_r.astype(cdt)
        h_i_c = h_i.astype(cdt)
        y_r = dot(h_r_c, w2r_ref[b]) - dot(h_i_c, w2i_ref[b]) + b2r_ref[b]
        # NOTE: uses y_r (the already-updated real output), as in PyTorch.
        y_i = dot(y_r.astype(cdt), w2i_ref[b]) + dot(h_i_c, w2r_ref[b]) + b2i_ref[b]

        # Pack both outputs into one wide lane-dense slab: [:, :ctot] = real.
        o_ref[:, sl] = y_r.astype(o_ref.dtype)
        o_ref[:, ctot + b * cp: ctot + (b + 1) * cp] = y_i.astype(o_ref.dtype)


def _bias_add_kernel(y_ref, x_ref, wbt_ref, bb_ref, o_ref):
    """out = y + x @ Wb^T + bb  (1x1 Conv1d bias path fused with the add)."""
    o_ref[...] = (y_ref[...]
                  + jnp.dot(x_ref[...], wbt_ref[...],
                            preferred_element_type=jnp.float32)
                  + bb_ref[...]).astype(o_ref.dtype)


# ----------------------------------------------------------------------------
# Wrappers
# ----------------------------------------------------------------------------
def spectral_mlp(xr, xi, w1r, w1i, w1s, w2r, w2i, b1r, b1i, b2r, b2i,
                 *, nb, bs, cp, compute_dtype):
    m, c = xr.shape
    assert c == nb * bs
    ctot = nb * cp

    def repack(a):                                   # (m, C) -> (m, nb*cp)
        a = a.reshape(m, nb, bs)
        if cp != bs:
            a = jnp.pad(a, ((0, 0), (0, 0), (0, cp - bs)))
        return a.reshape(m, ctot).astype(compute_dtype)

    xr_p = repack(xr)
    xi_p = repack(xi)

    tm = _row_tile(m)
    grid_m = pl.cdiv(m, tm)
    m_pad = grid_m * tm
    if m_pad != m:
        xr_p = jnp.pad(xr_p, ((0, m_pad - m), (0, 0)))
        xi_p = jnp.pad(xi_p, ((0, m_pad - m), (0, 0)))

    act_spec = pl.BlockSpec((tm, ctot), lambda i: (i, 0))
    out_spec = pl.BlockSpec((tm, 2 * ctot), lambda i: (i, 0))
    w_spec = _resident_spec((nb, cp, cp))
    b_spec = _resident_spec((nb, 1, cp))

    cdt_size = jnp.dtype(compute_dtype).itemsize
    weight_bytes = 5 * nb * cp * cp * cdt_size + 4 * nb * cp * 4
    vmem_est = (2 * 2 * tm * ctot * cdt_size      # xr, xi (double-buffered)
                + 2 * tm * 2 * ctot * 4           # packed output
                + weight_bytes)                   # resident weights/biases
    flops = 7 * 2 * m_pad * nb * cp * cp          # 7 matmuls per block
    bytes_accessed = (2 * m_pad * ctot * cdt_size
                      + m_pad * 2 * ctot * 4 + weight_bytes)

    out = pl.pallas_call(
        _spectral_mlp_kernel,
        out_shape=jax.ShapeDtypeStruct((m_pad, 2 * ctot), jnp.float32),
        grid=(grid_m,),
        in_specs=[act_spec, act_spec,
                  w_spec, w_spec, w_spec, w_spec, w_spec,
                  b_spec, b_spec, b_spec, b_spec],
        out_specs=out_spec,
        compiler_params=pltpu.CompilerParams(
            dimension_semantics=("parallel",),
            vmem_limit_bytes=_vmem_limit(vmem_est)),
        cost_estimate=pl.CostEstimate(
            flops=int(flops), transcendentals=0,
            bytes_accessed=int(bytes_accessed)),
    )(xr_p, xi_p, w1r, w1i, w1s, w2r, w2i, b1r, b1i, b2r, b2i)

    def unpack(a):                                   # (m, nb*cp) -> (m, C)
        a = a.reshape(m, nb, cp)
        if cp != bs:
            a = a[:, :, :bs]
        return a.reshape(m, c)

    return unpack(out[:m, :ctot]), unpack(out[:m, ctot:])


def bias_and_add(y_flat, x_flat, wbt_pad, bb_pad, *, compute_dtype):
    m, c = x_flat.shape
    cpad = wbt_pad.shape[0]

    def pad_cols(a):
        return jnp.pad(a, ((0, 0), (0, cpad - c))) if cpad != c else a

    y_p = pad_cols(y_flat.astype(jnp.float32))
    x_p = pad_cols(x_flat).astype(compute_dtype)

    tm = _row_tile(m)
    grid_m = pl.cdiv(m, tm)
    m_pad = grid_m * tm
    if m_pad != m:
        y_p = jnp.pad(y_p, ((0, m_pad - m), (0, 0)))
        x_p = jnp.pad(x_p, ((0, m_pad - m), (0, 0)))

    row_spec = pl.BlockSpec((tm, cpad), lambda i: (i, 0))
    w_spec = _resident_spec((cpad, cpad))
    b_spec = _resident_spec((1, cpad))

    cdt_size = jnp.dtype(compute_dtype).itemsize
    vmem_est = (2 * tm * cpad * 4 + 2 * tm * cpad * cdt_size
                + 2 * tm * cpad * 4 + cpad * cpad * cdt_size + cpad * 4)
    flops = 2 * m_pad * cpad * cpad
    bytes_accessed = (m_pad * cpad * (4 + cdt_size + 4)
                      + cpad * cpad * cdt_size + cpad * 4)

    out = pl.pallas_call(
        _bias_add_kernel,
        out_shape=jax.ShapeDtypeStruct((m_pad, cpad), jnp.float32),
        grid=(grid_m,),
        in_specs=[row_spec, row_spec, w_spec, b_spec],
        out_specs=pl.BlockSpec((tm, cpad), lambda i: (i, 0)),
        compiler_params=pltpu.CompilerParams(
            dimension_semantics=("parallel",),
            vmem_limit_bytes=_vmem_limit(vmem_est)),
        cost_estimate=pl.CostEstimate(
            flops=int(flops), transcendentals=0,
            bytes_accessed=int(bytes_accessed)),
    )(y_p, x_p, wbt_pad, bb_pad)

    return out[:m, :c]


# ----------------------------------------------------------------------------
# Module
# ----------------------------------------------------------------------------
class AdaptiveFourierNeuralOperator:
    """JAX/Pallas port of AdativeFourierNeuralOperator (forward only)."""

    def __init__(self, dim, h=16, w=16, is_fno_bias=True, key=None,
                 compute_dtype=jnp.bfloat16):
        self.hidden_size = dim
        self.h = h
        self.w = w
        self.num_blocks = 2
        self.block_size = dim // self.num_blocks
        assert dim % self.num_blocks == 0
        self.scale = 0.02
        self.is_fno_bias = is_fno_bias
        self.compute_dtype = compute_dtype   # MXU input dtype; accum stays f32

        if key is None:
            key = jax.random.PRNGKey(0)
        k1, k2, k3, k4, k5, k6 = jax.random.split(key, 6)
        nb, bs = self.num_blocks, self.block_size

        # Raw parameters, deterministic init (synthetic, not a checkpoint).
        self.w1 = self.scale * jax.random.normal(k1, (2, nb, bs, bs), jnp.float32)
        self.b1 = self.scale * jax.random.normal(k2, (2, nb, bs), jnp.float32)
        self.w2 = self.scale * jax.random.normal(k3, (2, nb, bs, bs), jnp.float32)
        self.b2 = self.scale * jax.random.normal(k4, (2, nb, bs), jnp.float32)
        # Conv1d(dim, dim, 1): weight (out, in), bias (out,)
        bound = 1.0 / (dim ** 0.5)
        self.conv_w = jax.random.uniform(k5, (dim, dim), jnp.float32,
                                         minval=-bound, maxval=bound)
        self.conv_b = jax.random.uniform(k6, (dim,), jnp.float32,
                                         minval=-bound, maxval=bound)

        # --- kernel-side parameters: per-block, lane-padded, pre-cast --------
        cp = _round_up(max(bs, 128), 128)         # per-block lane width
        cfull = _round_up(max(dim, 128), 128)     # conv-path lane width
        self.cp = cp
        self.c_pad = cfull
        cdt = compute_dtype

        def pad_w(w_nb):    # (nb, bs, bs) -> (nb, cp, cp)
            return jnp.pad(w_nb, ((0, 0), (0, cp - bs), (0, cp - bs)))

        def pad_b(b_nb):    # (nb, bs) -> (nb, 1, cp), kept f32
            return jnp.pad(b_nb, ((0, 0), (0, cp - bs))).reshape(nb, 1, cp)

        self.w1r_k = pad_w(self.w1[0]).astype(cdt)
        self.w1i_k = pad_w(self.w1[1]).astype(cdt)
        self.w1s_k = pad_w(self.w1[0] + self.w1[1]).astype(cdt)   # Karatsuba
        self.w2r_k = pad_w(self.w2[0]).astype(cdt)
        self.w2i_k = pad_w(self.w2[1]).astype(cdt)
        self.b1r_k = pad_b(self.b1[0]).astype(jnp.float32)
        self.b1i_k = pad_b(self.b1[1]).astype(jnp.float32)
        self.b2r_k = pad_b(self.b2[0]).astype(jnp.float32)
        self.b2i_k = pad_b(self.b2[1]).astype(jnp.float32)

        # Conv bias path: out = x @ W^T + b.  Transpose / pad / cast hoisted.
        wt = self.conv_w.T
        self.conv_wt_k = jnp.pad(
            wt, ((0, cfull - dim), (0, cfull - dim))).astype(cdt)
        self.conv_b_k = jnp.pad(
            self.conv_b, (0, cfull - dim)).reshape(1, cfull).astype(jnp.float32)

    def __call__(self, x):
        # x: (B, N, C), N = h * w
        B, N, C = x.shape
        h, w = self.h, self.w
        assert N == h * w and C == self.hidden_size

        x = x.astype(jnp.float32)
        x_spatial = x.reshape(B, h, w, C)

        # TODO(synk): rfft2/irfft2 have no Pallas primitive; they stay in JAX.
        xf = jnp.fft.rfft2(x_spatial, axes=(1, 2), norm="ortho")
        wr = xf.shape[2]
        m = B * h * wr

        xr = jnp.real(xf).reshape(m, C)
        xi = jnp.imag(xf).reshape(m, C)

        yr, yi = spectral_mlp(
            xr, xi,
            self.w1r_k, self.w1i_k, self.w1s_k, self.w2r_k, self.w2i_k,
            self.b1r_k, self.b1i_k, self.b2r_k, self.b2i_k,
            nb=self.num_blocks, bs=self.block_size, cp=self.cp,
            compute_dtype=self.compute_dtype)

        yf = (yr + 1j * yi).reshape(B, h, wr, C)
        y_spatial = jnp.fft.irfft2(yf, s=(h, w), axes=(1, 2), norm="ortho")
        y_flat = y_spatial.reshape(B * N, C)

        if self.is_fno_bias:
            out = bias_and_add(y_flat, x.reshape(B * N, C),
                               self.conv_wt_k, self.conv_b_k,
                               compute_dtype=self.compute_dtype)
        else:
            out = y_flat   # reference adds an all-zeros bias in this branch

        return out.reshape(B, N, C)


# ----------------------------------------------------------------------------
# Pure-JAX f32 reference (mirrors the PyTorch forward, incl. the aliasing)
# ----------------------------------------------------------------------------
def _reference_forward(module, x):
    B, N, C = x.shape
    nb, bs = module.num_blocks, module.block_size
    h, w = module.h, module.w
    if module.is_fno_bias:
        bias = jnp.einsum('bnc,oc->bno', x, module.conv_w) + module.conv_b
    else:
        bias = jnp.zeros_like(x)
    xs = x.reshape(B, h, w, C)
    xf = jnp.fft.rfft2(xs, axes=(1, 2), norm="ortho")
    xf = xf.reshape(B, h, xf.shape[2], nb, bs)
    mul = lambda a, wgt: jnp.einsum('...bd,bdk->...bk', a, wgt)
    hr = jax.nn.relu(mul(xf.real, module.w1[0]) - mul(xf.imag, module.w1[1]) + module.b1[0])
    hi = jax.nn.relu(mul(xf.real, module.w1[1]) + mul(xf.imag, module.w1[0]) + module.b1[1])
    yr = mul(hr, module.w2[0]) - mul(hi, module.w2[1]) + module.b2[0]
    yi = mul(yr, module.w2[1]) + mul(hi, module.w2[0]) + module.b2[1]   # aliasing
    yf = (yr + 1j * yi).reshape(B, h, -1, C)
    y = jnp.fft.irfft2(yf, s=(h, w), axes=(1, 2), norm="ortho").reshape(B, N, C)
    return y + bias


# ----------------------------------------------------------------------------
# Demo
# ----------------------------------------------------------------------------
if __name__ == "__main__":
    key = jax.random.PRNGKey(0)
    k_param, k_x = jax.random.split(key)

    B, dim, h, w = 2, 8, 16, 16
    N = h * w

    module = AdaptiveFourierNeuralOperator(dim, h=h, w=w, is_fno_bias=True,
                                           key=k_param)
    x = jax.random.normal(k_x, (B, N, dim), jnp.float32)

    out = jax.block_until_ready(module(x))
    assert out.shape == (B, N, dim)

    # Sanity check vs. the f32 reference (loose tol: bf16 MXU inputs).
    ref = jax.block_until_ready(_reference_forward(module, x))
    max_err = float(jnp.max(jnp.abs(out - ref)))
    assert max_err < 5e-2, f"max abs error too large: {max_err}"

    print("KERNEL_OK")
</pallas_src>

<mosaic_0001>
module attributes {stable_mosaic.version = 11 : i64} {
  func.func @_spectral_mlp_kernel(%arg0: i32, %arg1: memref<72x256xbf16, #tpu.memory_space<vmem>>, %arg2: memref<72x256xbf16, #tpu.memory_space<vmem>>, %arg3: memref<2x128x128xbf16, #tpu.memory_space<vmem>>, %arg4: memref<2x128x128xbf16, #tpu.memory_space<vmem>>, %arg5: memref<2x128x128xbf16, #tpu.memory_space<vmem>>, %arg6: memref<2x128x128xbf16, #tpu.memory_space<vmem>>, %arg7: memref<2x128x128xbf16, #tpu.memory_space<vmem>>, %arg8: memref<2x1x128xf32, #tpu.memory_space<vmem>>, %arg9: memref<2x1x128xf32, #tpu.memory_space<vmem>>, %arg10: memref<2x1x128xf32, #tpu.memory_space<vmem>>, %arg11: memref<2x1x128xf32, #tpu.memory_space<vmem>>, %arg12: memref<72x512xf32, #tpu.memory_space<vmem>>) attributes {dimension_semantics = [#tpu.dimension_semantics<parallel>], iteration_bounds = array<i64: 4>, scalar_prefetch = 0 : i64, scratch_operands = 0 : i64, tpu.core_type = #tpu.core_type<tc>, window_params = [{transform_indices = @transform_0, window_bounds = array<i64: 72, 256>}, {transform_indices = @transform_1, window_bounds = array<i64: 72, 256>}, {pipeline_mode = #tpu.pipeline_mode<synchronous>, transform_indices = @transform_2, window_bounds = array<i64: 2, 128, 128>}, {pipeline_mode = #tpu.pipeline_mode<synchronous>, transform_indices = @transform_3, window_bounds = array<i64: 2, 128, 128>}, {pipeline_mode = #tpu.pipeline_mode<synchronous>, transform_indices = @transform_4, window_bounds = array<i64: 2, 128, 128>}, {pipeline_mode = #tpu.pipeline_mode<synchronous>, transform_indices = @transform_5, window_bounds = array<i64: 2, 128, 128>}, {pipeline_mode = #tpu.pipeline_mode<synchronous>, transform_indices = @transform_6, window_bounds = array<i64: 2, 128, 128>}, {pipeline_mode = #tpu.pipeline_mode<synchronous>, transform_indices = @transform_7, window_bounds = array<i64: 2, 1, 128>}, {pipeline_mode = #tpu.pipeline_mode<synchronous>, transform_indices = @transform_8, window_bounds = array<i64: 2, 1, 128>}, {pipeline_mode = #tpu.pipeline_mode<synchronous>, transform_indices = @transform_9, window_bounds = array<i64: 2, 1, 128>}, {pipeline_mode = #tpu.pipeline_mode<synchronous>, transform_indices = @transform_10, window_bounds = array<i64: 2, 1, 128>}, {transform_indices = @transform_11, window_bounds = array<i64: 72, 512>}]} {
    %c0 = arith.constant 0 : index
    %c0_0 = arith.constant 0 : index
    %0 = vector.load %arg1[%c0, %c0_0] : memref<72x256xbf16, #tpu.memory_space<vmem>>, vector<72x128xbf16>
    %c0_1 = arith.constant 0 : index
    %c0_2 = arith.constant 0 : index
    %1 = vector.load %arg2[%c0_1, %c0_2] : memref<72x256xbf16, #tpu.memory_space<vmem>>, vector<72x128xbf16>
    %c0_3 = arith.constant 0 : index
    %c0_4 = arith.constant 0 : index
    %c0_5 = arith.constant 0 : index
    %2 = vector.load %arg3[%c0_3, %c0_4, %c0_5] : memref<2x128x128xbf16, #tpu.memory_space<vmem>>, vector<1x128x128xbf16>
    %3 = vector.shape_cast %2 : vector<1x128x128xbf16> to vector<128x128xbf16>
    %cst = arith.constant dense<0.000000e+00> : vector<72x128xf32>
    %4 = tpu.matmul %0, %3, %cst {dimension_numbers = #tpu.dot_dimension_numbers<[1], [0], [0], [1], [0, 0, 1, 1], [], []>} : vector<72x128xbf16>, vector<128x128xbf16>, vector<72x128xf32> -> vector<72x128xf32>
    %c0_6 = arith.constant 0 : index
    %c0_7 = arith.constant 0 : index
    %c0_8 = arith.constant 0 : index
    %5 = vector.load %arg4[%c0_6, %c0_7, %c0_8] : memref<2x128x128xbf16, #tpu.memory_space<vmem>>, vector<1x128x128xbf16>
    %6 = vector.shape_cast %5 : vector<1x128x128xbf16> to vector<128x128xbf16>
    %cst_9 = arith.constant dense<0.000000e+00> : vector<72x128xf32>
    %7 = tpu.matmul %1, %6, %cst_9 {dimension_numbers = #tpu.dot_dimension_numbers<[1], [0], [0], [1], [0, 0, 1, 1], [], []>} : vector<72x128xbf16>, vector<128x128xbf16>, vector<72x128xf32> -> vector<72x128xf32>
    %8 = arith.addf %0, %1 : vector<72x128xbf16>
    %c0_10 = arith.constant 0 : index
    %c0_11 = arith.constant 0 : index
    %c0_12 = arith.constant 0 : index
    %9 = vector.load %arg5[%c0_10, %c0_11, %c0_12] : memref<2x128x128xbf16, #tpu.memory_space<vmem>>, vector<1x128x128xbf16>
    %10 = vector.shape_cast %9 : vector<1x128x128xbf16> to vector<128x128xbf16>
    %cst_13 = arith.constant dense<0.000000e+00> : vector<72x128xf32>
    %11 = tpu.matmul %8, %10, %cst_13 {dimension_numbers = #tpu.dot_dimension_numbers<[1], [0], [0], [1], [0, 0, 1, 1], [], []>} : vector<72x128xbf16>, vector<128x128xbf16>, vector<72x128xf32> -> vector<72x128xf32>
    %12 = arith.subf %4, %7 : vector<72x128xf32>
    %c0_14 = arith.constant 0 : index
    %c0_15 = arith.constant 0 : index
    %c0_16 = arith.constant 0 : index
    %13 = vector.load %arg8[%c0_14, %c0_15, %c0_16] : memref<2x1x128xf32, #tpu.memory_space<vmem>>, vector<1x1x128xf32>
    %14 = vector.shape_cast %13 : vector<1x1x128xf32> to vector<1x128xf32>
    %15 = vector.broadcast %14 : vector<1x128xf32> to vector<72x128xf32>
    %16 = arith.addf %12, %15 : vector<72x128xf32>
    %cst_17 = arith.constant 0.000000e+00 : f32
    %17 = vector.broadcast %cst_17 : f32 to vector<72x128xf32>
    %18 = arith.maximumf %16, %17 : vector<72x128xf32>
    %19 = arith.subf %11, %4 : vector<72x128xf32>
    %20 = arith.subf %19, %7 : vector<72x128xf32>
    %c0_18 = arith.constant 0 : index
    %c0_19 = arith.constant 0 : index
    %c0_20 = arith.constant 0 : index
    %21 = vector.load %arg9[%c0_18, %c0_19, %c0_20] : memref<2x1x128xf32, #tpu.memory_space<vmem>>, vector<1x1x128xf32>
    %22 = vector.shape_cast %21 : vector<1x1x128xf32> to vector<1x128xf32>
    %23 = vector.broadcast %22 : vector<1x128xf32> to vector<72x128xf32>
    %24 = arith.addf %20, %23 : vector<72x128xf32>
    %cst_21 = arith.constant 0.000000e+00 : f32
    %25 = vector.broadcast %cst_21 : f32 to vector<72x128xf32>
    %26 = arith.maximumf %24, %25 : vector<72x128xf32>
    %27 = arith.truncf %18 : vector<72x128xf32> to vector<72x128xbf16>
    %28 = arith.truncf %26 : vector<72x128xf32> to vector<72x128xbf16>
    %c0_22 = arith.constant 0 : index
    %c0_23 = arith.constant 0 : index
    %c0_24 = arith.constant 0 : index
    %29 = vector.load %arg6[%c0_22, %c0_23, %c0_24] : memref<2x128x128xbf16, #tpu.memory_space<vmem>>, vector<1x128x128xbf16>
    %30 = vector.shape_cast %29 : vector<1x128x128xbf16> to vector<128x128xbf16>
    %cst_25 = arith.constant dense<0.000000e+00> : vector<72x128xf32>
    %31 = tpu.matmul %27, %30, %cst_25 {dimension_numbers = #tpu.dot_dimension_numbers<[1], [0], [0], [1], [0, 0, 1, 1], [], []>} : vector<72x128xbf16>, vector<128x128xbf16>, vector<72x128xf32> -> vector<72x128xf32>
    %c0_26 = arith.constant 0 : index
    %c0_27 = arith.constant 0 : index
    %c0_28 = arith.constant 0 : index
    %32 = vector.load %arg7[%c0_26, %c0_27, %c0_28] : memref<2x128x128xbf16, #tpu.memory_space<vmem>>, vector<1x128x128xbf16>
    %33 = vector.shape_cast %32 : vector<1x128x128xbf16> to vector<128x128xbf16>
    %cst_29 = arith.constant dense<0.000000e+00> : vector<72x128xf32>
    %34 = tpu.matmul %28, %33, %cst_29 {dimension_numbers = #tpu.dot_dimension_numbers<[1], [0], [0], [1], [0, 0, 1, 1], [], []>} : vector<72x128xbf16>, vector<128x128xbf16>, vector<72x128xf32> -> vector<72x128xf32>
    %35 = arith.subf %31, %34 : vector<72x128xf32>
    %c0_30 = arith.constant 0 : index
    %c0_31 = arith.constant 0 : index
    %c0_32 = arith.constant 0 : index
    %36 = vector.load %arg10[%c0_30, %c0_31, %c0_32] : memref<2x1x128xf32, #tpu.memory_space<vmem>>, vector<1x1x128xf32>
    %37 = vector.shape_cast %36 : vector<1x1x128xf32> to vector<1x128xf32>
    %38 = vector.broadcast %37 : vector<1x128xf32> to vector<72x128xf32>
    %39 = arith.addf %35, %38 : vector<72x128xf32>
    %40 = arith.truncf %39 : vector<72x128xf32> to vector<72x128xbf16>
    %c0_33 = arith.constant 0 : index
    %c0_34 = arith.constant 0 : index
    %c0_35 = arith.constant 0 : index
    %41 = vector.load %arg7[%c0_33, %c0_34, %c0_35] : memref<2x128x128xbf16, #tpu.memory_space<vmem>>, vector<1x128x128xbf16>
    %42 = vector.shape_cast %41 : vector<1x128x128xbf16> to vector<128x128xbf16>
    %cst_36 = arith.constant dense<0.000000e+00> : vector<72x128xf32>
    %43 = tpu.matmul %40, %42, %cst_36 {dimension_numbers = #tpu.dot_dimension_numbers<[1], [0], [0], [1], [0, 0, 1, 1], [], []>} : vector<72x128xbf16>, vector<128x128xbf16>, vector<72x128xf32> -> vector<72x128xf32>
    %c0_37 = arith.constant 0 : index
    %c0_38 = arith.constant 0 : index
    %c0_39 = arith.constant 0 : index
    %44 = vector.load %arg6[%c0_37, %c0_38, %c0_39] : memref<2x128x128xbf16, #tpu.memory_space<vmem>>, vector<1x128x128xbf16>
    %45 = vector.shape_cast %44 : vector<1x128x128xbf16> to vector<128x128xbf16>
    %cst_40 = arith.constant dense<0.000000e+00> : vector<72x128xf32>
    %46 = tpu.matmul %28, %45, %cst_40 {dimension_numbers = #tpu.dot_dimension_numbers<[1], [0], [0], [1], [0, 0, 1, 1], [], []>} : vector<72x128xbf16>, vector<128x128xbf16>, vector<72x128xf32> -> vector<72x128xf32>
    %47 = arith.addf %43, %46 : vector<72x128xf32>
    %c0_41 = arith.constant 0 : index
    %c0_42 = arith.constant 0 : index
    %c0_43 = arith.constant 0 : index
    %48 = vector.load %arg11[%c0_41, %c0_42, %c0_43] : memref<2x1x128xf32, #tpu.memory_space<vmem>>, vector<1x1x128xf32>
    %49 = vector.shape_cast %48 : vector<1x1x128xf32> to vector<1x128xf32>
    %50 = vector.broadcast %49 : vector<1x128xf32> to vector<72x128xf32>
    %51 = arith.addf %47, %50 : vector<72x128xf32>
    %c0_44 = arith.constant 0 : index
    %c0_45 = arith.constant 0 : index
    %52 = vector.load %arg12[%c0_44, %c0_45] : memref<72x512xf32, #tpu.memory_space<vmem>>, vector<72x128xf32>
    tpu.vector_store %arg12[%c0_44, %c0_45], %39 {strides = array<i32>} : memref<72x512xf32, #tpu.memory_space<vmem>>, vector<72x128xf32>,
    %c0_46 = arith.constant 0 : index
    %c256 = arith.constant 256 : index
    %53 = vector.load %arg12[%c0_46, %c256] : memref<72x512xf32, #tpu.memory_space<vmem>>, vector<72x128xf32>
    tpu.vector_store %arg12[%c0_46, %c256], %51 {strides = array<i32>} : memref<72x512xf32, #tpu.memory_space<vmem>>, vector<72x128xf32>,
    %c0_47 = arith.constant 0 : index
    %c128 = arith.constant 128 : index
    %54 = vector.load %arg1[%c0_47, %c128] : memref<72x256xbf16, #tpu.memory_space<vmem>>, vector<72x128xbf16>
    %c0_48 = arith.constant 0 : index
    %c128_49 = arith.constant 128 : index
    %55 = vector.load %arg2[%c0_48, %c128_49] : memref<72x256xbf16, #tpu.memory_space<vmem>>, vector<72x128xbf16>
    %c1 = arith.constant 1 : index
    %c0_50 = arith.constant 0 : index
    %c0_51 = arith.constant 0 : index
    %56 = vector.load %arg3[%c1, %c0_50, %c0_51] : memref<2x128x128xbf16, #tpu.memory_space<vmem>>, vector<1x128x128xbf16>
    %57 = vector.shape_cast %56 : vector<1x128x128xbf16> to vector<128x128xbf16>
    %cst_52 = arith.constant dense<0.000000e+00> : vector<72x128xf32>
    %58 = tpu.matmul %54, %57, %cst_52 {dimension_numbers = #tpu.dot_dimension_numbers<[1], [0], [0], [1], [0, 0, 1, 1], [], []>} : vector<72x128xbf16>, vector<128x128xbf16>, vector<72x128xf32> -> vector<72x128xf32>
    %c1_53 = arith.constant 1 : index
    %c0_54 = arith.constant 0 : index
    %c0_55 = arith.constant 0 : index
    %59 = vector.load %arg4[%c1_53, %c0_54, %c0_55] : memref<2x128x128xbf16, #tpu.memory_space<vmem>>, vector<1x128x128xbf16>
    %60 = vector.shape_cast %59 : vector<1x128x128xbf16> to vector<128x128xbf16>
    %cst_56 = arith.constant dense<0.000000e+00> : vector<72x128xf32>
    %61 = tpu.matmul %55, %60, %cst_56 {dimension_numbers = #tpu.dot_dimension_numbers<[1], [0], [0], [1], [0, 0, 1, 1], [], []>} : vector<72x128xbf16>, vector<128x128xbf16>, vector<72x128xf32> -> vector<72x128xf32>
    %62 = arith.addf %54, %55 : vector<72x128xbf16>
    %c1_57 = arith.constant 1 : index
    %c0_58 = arith.constant 0 : index
    %c0_59 = arith.constant 0 : index
    %63 = vector.load %arg5[%c1_57, %c0_58, %c0_59] : memref<2x128x128xbf16, #tpu.memory_space<vmem>>, vector<1x128x128xbf16>
    %64 = vector.shape_cast %63 : vector<1x128x128xbf16> to vector<128x128xbf16>
    %cst_60 = arith.constant dense<0.000000e+00> : vector<72x128xf32>
    %65 = tpu.matmul %62, %64, %cst_60 {dimension_numbers = #tpu.dot_dimension_numbers<[1], [0], [0], [1], [0, 0, 1, 1], [], []>} : vector<72x128xbf16>, vector<128x128xbf16>, vector<72x128xf32> -> vector<72x128xf32>
    %66 = arith.subf %58, %61 : vector<72x128xf32>
    %c1_61 = arith.constant 1 : index
    %c0_62 = arith.constant 0 : index
    %c0_63 = arith.constant 0 : index
    %67 = vector.load %arg8[%c1_61, %c0_62, %c0_63] : memref<2x1x128xf32, #tpu.memory_space<vmem>>, vector<1x1x128xf32>
    %68 = vector.shape_cast %67 : vector<1x1x128xf32> to vector<1x128xf32>
    %69 = vector.broadcast %68 : vector<1x128xf32> to vector<72x128xf32>
    %70 = arith.addf %66, %69 : vector<72x128xf32>
    %cst_64 = arith.constant 0.000000e+00 : f32
    %71 = vector.broadcast %cst_64 : f32 to vector<72x128xf32>
    %72 = arith.maximumf %70, %71 : vector<72x128xf32>
    %73 = arith.subf %65, %58 : vector<72x128xf32>
    %74 = arith.subf %73, %61 : vector<72x128xf32>
    %c1_65 = arith.constant 1 : index
    %c0_66 = arith.constant 0 : index
    %c0_67 = arith.constant 0 : index
    %75 = vector.load %arg9[%c1_65, %c0_66, %c0_67] : memref<2x1x128xf32, #tpu.memory_space<vmem>>, vector<1x1x128xf32>
    %76 = vector.shape_cast %75 : vector<1x1x128xf32> to vector<1x128xf32>
    %77 = vector.broadcast %76 : vector<1x128xf32> to vector<72x128xf32>
    %78 = arith.addf %74, %77 : vector<72x128xf32>
    %cst_68 = arith.constant 0.000000e+00 : f32
    %79 = vector.broadcast %cst_68 : f32 to vector<72x128xf32>
    %80 = arith.maximumf %78, %79 : vector<72x128xf32>
    %81 = arith.truncf %72 : vector<72x128xf32> to vector<72x128xbf16>
    %82 = arith.truncf %80 : vector<72x128xf32> to vector<72x128xbf16>
    %c1_69 = arith.constant 1 : index
    %c0_70 = arith.constant 0 : index
    %c0_71 = arith.constant 0 : index
    %83 = vector.load %arg6[%c1_69, %c0_70, %c0_71] : memref<2x128x128xbf16, #tpu.memory_space<vmem>>, vector<1x128x128xbf16>
    %84 = vector.shape_cast %83 : vector<1x128x128xbf16> to vector<128x128xbf16>
    %cst_72 = arith.constant dense<0.000000e+00> : vector<72x128xf32>
    %85 = tpu.matmul %81, %84, %cst_72 {dimension_numbers = #tpu.dot_dimension_numbers<[1], [0], [0], [1], [0, 0, 1, 1], [], []>} : vector<72x128xbf16>, vector<128x128xbf16>, vector<72x128xf32> -> vector<72x128xf32>
    %c1_73 = arith.constant 1 : index
    %c0_74 = arith.constant 0 : index
    %c0_75 = arith.constant 0 : index
    %86 = vector.load %arg7[%c1_73, %c0_74, %c0_75] : memref<2x128x128xbf16, #tpu.memory_space<vmem>>, vector<1x128x128xbf16>
    %87 = vector.shape_cast %86 : vector<1x128x128xbf16> to vector<128x128xbf16>
    %cst_76 = arith.constant dense<0.000000e+00> : vector<72x128xf32>
    %88 = tpu.matmul %82, %87, %cst_76 {dimension_numbers = #tpu.dot_dimension_numbers<[1], [0], [0], [1], [0, 0, 1, 1], [], []>} : vector<72x128xbf16>, vector<128x128xbf16>, vector<72x128xf32> -> vector<72x128xf32>
    %89 = arith.subf %85, %88 : vector<72x128xf32>
    %c1_77 = arith.constant 1 : index
    %c0_78 = arith.constant 0 : index
    %c0_79 = arith.constant 0 : index
    %90 = vector.load %arg10[%c1_77, %c0_78, %c0_79] : memref<2x1x128xf32, #tpu.memory_space<vmem>>, vector<1x1x128xf32>
    %91 = vector.shape_cast %90 : vector<1x1x128xf32> to vector<1x128xf32>
    %92 = vector.broadcast %91 : vector<1x128xf32> to vector<72x128xf32>
    %93 = arith.addf %89, %92 : vector<72x128xf32>
    %94 = arith.truncf %93 : vector<72x128xf32> to vector<72x128xbf16>
    %c1_80 = arith.constant 1 : index
    %c0_81 = arith.constant 0 : index
    %c0_82 = arith.constant 0 : index
    %95 = vector.load %arg7[%c1_80, %c0_81, %c0_82] : memref<2x128x128xbf16, #tpu.memory_space<vmem>>, vector<1x128x128xbf16>
    %96 = vector.shape_cast %95 : vector<1x128x128xbf16> to vector<128x128xbf16>
    %cst_83 = arith.constant dense<0.000000e+00> : vector<72x128xf32>
    %97 = tpu.matmul %94, %96, %cst_83 {dimension_numbers = #tpu.dot_dimension_numbers<[1], [0], [0], [1], [0, 0, 1, 1], [], []>} : vector<72x128xbf16>, vector<128x128xbf16>, vector<72x128xf32> -> vector<72x128xf32>
    %c1_84 = arith.constant 1 : index
    %c0_85 = arith.constant 0 : index
    %c0_86 = arith.constant 0 : index
    %98 = vector.load %arg6[%c1_84, %c0_85, %c0_86] : memref<2x128x128xbf16, #tpu.memory_space<vmem>>, vector<1x128x128xbf16>
    %99 = vector.shape_cast %98 : vector<1x128x128xbf16> to vector<128x128xbf16>
    %cst_87 = arith.constant dense<0.000000e+00> : vector<72x128xf32>
    %100 = tpu.matmul %82, %99, %cst_87 {dimension_numbers = #tpu.dot_dimension_numbers<[1], [0], [0], [1], [0, 0, 1, 1], [], []>} : vector<72x128xbf16>, vector<128x128xbf16>, vector<72x128xf32> -> vector<72x128xf32>
    %101 = arith.addf %97, %100 : vector<72x128xf32>
    %c1_88 = arith.constant 1 : index
    %c0_89 = arith.constant 0 : index
    %c0_90 = arith.constant 0 : index
    %102 = vector.load %arg11[%c1_88, %c0_89, %c0_90] : memref<2x1x128xf32, #tpu.memory_space<vmem>>, vector<1x1x128xf32>
    %103 = vector.shape_cast %102 : vector<1x1x128xf32> to vector<1x128xf32>
    %104 = vector.broadcast %103 : vector<1x128xf32> to vector<72x128xf32>
    %105 = arith.addf %101, %104 : vector<72x128xf32>
    %c0_91 = arith.constant 0 : index
    %c128_92 = arith.constant 128 : index
    %106 = vector.load %arg12[%c0_91, %c128_92] : memref<72x512xf32, #tpu.memory_space<vmem>>, vector<72x128xf32>
    tpu.vector_store %arg12[%c0_91, %c128_92], %93 {strides = array<i32>} : memref<72x512xf32, #tpu.memory_space<vmem>>, vector<72x128xf32>,
    %c0_93 = arith.constant 0 : index
    %c384 = arith.constant 384 : index
    %107 = vector.load %arg12[%c0_93, %c384] : memref<72x512xf32, #tpu.memory_space<vmem>>, vector<72x128xf32>
    tpu.vector_store %arg12[%c0_93, %c384], %105 {strides = array<i32>} : memref<72x512xf32, #tpu.memory_space<vmem>>, vector<72x128xf32>,
    return
  }
  func.func @transform_0(%arg0: i32) -> (i32, i32) {
    %c0_i32 = arith.constant 0 : i32
    %c0_i32_0 = arith.constant 0 : i32
    return %arg0, %c0_i32 : i32, i32
  }
  func.func @transform_1(%arg0: i32) -> (i32, i32) {
    %c0_i32 = arith.constant 0 : i32
    %c0_i32_0 = arith.constant 0 : i32
    return %arg0, %c0_i32 : i32, i32
  }
  func.func @transform_2(%arg0: i32) -> (i32, i32, i32) {
    %c0_i32 = arith.constant 0 : i32
    %c0_i32_0 = arith.constant 0 : i32
    %c0_i32_1 = arith.constant 0 : i32
    %c0_i32_2 = arith.constant 0 : i32
    return %c0_i32, %c0_i32_0, %c0_i32_1 : i32, i32, i32
  }
  func.func @transform_3(%arg0: i32) -> (i32, i32, i32) {
    %c0_i32 = arith.constant 0 : i32
    %c0_i32_0 = arith.constant 0 : i32
    %c0_i32_1 = arith.constant 0 : i32
    %c0_i32_2 = arith.constant 0 : i32
    return %c0_i32, %c0_i32_0, %c0_i32_1 : i32, i32, i32
  }
  func.func @transform_4(%arg0: i32) -> (i32, i32, i32) {
    %c0_i32 = arith.constant 0 : i32
    %c0_i32_0 = arith.constant 0 : i32
    %c0_i32_1 = arith.constant 0 : i32
    %c0_i32_2 = arith.constant 0 : i32
    return %c0_i32, %c0_i32_0, %c0_i32_1 : i32, i32, i32
  }
  func.func @transform_5(%arg0: i32) -> (i32, i32, i32) {
    %c0_i32 = arith.constant 0 : i32
    %c0_i32_0 = arith.constant 0 : i32
    %c0_i32_1 = arith.constant 0 : i32
    %c0_i32_2 = arith.constant 0 : i32
    return %c0_i32, %c0_i32_0, %c0_i32_1 : i32, i32, i32
  }
  func.func @transform_6(%arg0: i32) -> (i32, i32, i32) {
    %c0_i32 = arith.constant 0 : i32
    %c0_i32_0 = arith.constant 0 : i32
    %c0_i32_1 = arith.constant 0 : i32
    %c0_i32_2 = arith.constant 0 : i32
    return %c0_i32, %c0_i32_0, %c0_i32_1 : i32, i32, i32
  }
  func.func @transform_7(%arg0: i32) -> (i32, i32, i32) {
    %c0_i32 = arith.constant 0 : i32
    %c0_i32_0 = arith.constant 0 : i32
    %c0_i32_1 = arith.constant 0 : i32
    %c0_i32_2 = arith.constant 0 : i32
    return %c0_i32, %c0_i32_0, %c0_i32_1 : i32, i32, i32
  }
  func.func @transform_8(%arg0: i32) -> (i32, i32, i32) {
    %c0_i32 = arith.constant 0 : i32
    %c0_i32_0 = arith.constant 0 : i32
    %c0_i32_1 = arith.constant 0 : i32
    %c0_i32_2 = arith.constant 0 : i32
    return %c0_i32, %c0_i32_0, %c0_i32_1 : i32, i32, i32
  }
  func.func @transform_9(%arg0: i32) -> (i32, i32, i32) {
    %c0_i32 = arith.constant 0 : i32
    %c0_i32_0 = arith.constant 0 : i32
    %c0_i32_1 = arith.constant 0 : i32
    %c0_i32_2 = arith.constant 0 : i32
    return %c0_i32, %c0_i32_0, %c0_i32_1 : i32, i32, i32
  }
  func.func @transform_10(%arg0: i32) -> (i32, i32, i32) {
    %c0_i32 = arith.constant 0 : i32
    %c0_i32_0 = arith.constant 0 : i32
    %c0_i32_1 = arith.constant 0 : i32
    %c0_i32_2 = arith.constant 0 : i32
    return %c0_i32, %c0_i32_0, %c0_i32_1 : i32, i32, i32
  }
  func.func @transform_11(%arg0: i32) -> (i32, i32) {
    %c0_i32 = arith.constant 0 : i32
    %c0_i32_0 = arith.constant 0 : i32
    return %arg0, %c0_i32 : i32, i32
  }
}

</mosaic_0001>

<bundles_post_ra>
// kernel: tpu_custom_call.1
= control target key start
LH: loop header
LB: loop body
LE: loop exit
PB: predicated region body
PF: predicated region fallthrough
CT: control target
= control target key end

     0   :  { %s5501_s0 = inlined_call_operand.hbm [shape: bf16[288,256], index: 0, kind: input, shape index: {}]   ;;  %s5502_s1 = inlined_call_operand.hbm [shape: bf16[288,256], index: 1, kind: input, shape index: {}]   ;;  %s5503_s2 = inlined_call_operand.hbm [shape: bf16[2,128,128], index: 2, kind: input, shape index: {}]   ;;  %s5504_s3 = inlined_call_operand.hbm [shape: bf16[2,128,128], index: 3, kind: input, shape index: {}]   ;;  %s5505_s4 = inlined_call_operand.hbm [shape: bf16[2,128,128], index: 4, kind: input, shape index: {}]   ;;  %s5506_s5 = inlined_call_operand.hbm [shape: bf16[2,128,128], index: 5, kind: input, shape index: {}]   ;;  %s5507_s6 = inlined_call_operand.hbm [shape: bf16[2,128,128], index: 6, kind: input, shape index: {}]   ;;  %s5508_s7 = inlined_call_operand.vmem [shape: f32[2,1,128], index: 7, kind: input, shape index: {}]   ;;  %s5509_s8 = inlined_call_operand.vmem [shape: f32[2,1,128], index: 8, kind: input, shape index: {}]   ;;  %s5510_s9 = inlined_call_operand.vmem [shape: f32[2,1,128], index: 9, kind: input, shape index: {}]   ;;  %s5511_s10 = inlined_call_operand.vmem [shape: f32[2,1,128], index: 10, kind: input, shape index: {}]   ;;  %s5512_s11 = inlined_call_operand.hbm [shape: f32[288,512], index: 11, kind: output, shape index: {}]  }
   0x1   :  { %5520 = sst [smem:[#allocation21_spill]] %s5501_s0 }
   0x2   :  { %5521 = sst [smem:[#allocation22_spill]] %s5503_s2 }
   0x3   :  { %5522 = sst [smem:[#allocation23_spill]] %s5504_s3 }
   0x4   :  { %5523 = sst [smem:[#allocation24_spill]] %s5505_s4 }
   0x5   :  { %5524 = sst [smem:[#allocation25_spill]] %s5506_s5 }
   0x6   :  { %5525 = sst [smem:[#allocation26_spill]] %s5510_s9 }
   0x7   :  { %5526 = sst [smem:[#allocation27_spill]] %s5511_s10 }
   0x8   :  { %5527 = sst [smem:[#allocation28_spill]] %s5512_s11 }
   0x9   :  { %16 = vsyncpa [#allocation3], 0 }
   0xa   :  { %18 = vsyncpa [#allocation3 + $0x1], 0 }
   0xb   :  { %19 = vsyncpa [#allocation6], 0 }
   0xc   :  { %21 = vsyncpa [#allocation6 + $0x1], 0 }
   0xd   :  { %22 = vsyncpa [#allocation9], 0 }
   0xe   :  { %23 = vsyncpa [#allocation12], 0 }
   0xf   :  { %24 = vsyncpa [#allocation4], 0 }
  0x10   :  { %26 = vsyncpa [#allocation4 + $0x1], 0  ;;  %s4275_s17 = smov 0   ;;  %s4277_s18 = smov 0  }
  0x11   :  { %s4279_s19 = smov 0   ;;  %s4281_s20 = smov 0  }
  0x12 LB: > { %s4199_s21 = smov [#allocation7]   ;;  %s4296_s23 = sadd.s32 4294967295, %s4197_s20   ;;  %s4197_s20 = sphi %s4281_s20, %s5560_s20   ;;  %s4193_s19 = sphi %s4279_s19, %s5559_s19   ;;  %s4189_s18 = sphi %s4277_s18, %s5558_s18   ;;  %s4185_s17 = sphi %s4275_s17, %s5557_s17  }
  0x13   : > { %s316_s22 = sshll.u32 %s4199_s21, 4  ;;  %p2863_p0 = scmp.ge.s32.totalorder %s4197_s20, 1  ;;  %s4301_s22 = int_to_ptr.vmem [resolvable:$true] %s316_s22 }
  0x14   : > { %p5516_p1 = scmp.eq.s32.totalorder %s4296_s23, 0  ;;  %p304_p2 = scmp.lt.s32.totalorder %s4197_s20, 5 }
  0x15   : > { %s4200_s25 = smov [#allocation8]   ;;  %s4201_s28 = smov [#allocation11]  }
  0x16   : > { %p4303_p3 = pnand %p2863_p0, %p304_p2  ;;  %s329_s26 = sshll.u32 %s4200_s25, 4  ;;  %s4315_s26 = int_to_ptr.vmem [resolvable:$true] %s329_s26 }
  0x17   : > { %s355_s29 = sshll.u32 %s4201_s28, 4  ;;  %s5530_s2 = sld [smem:[#allocation22_spill]]  ;;  %s4317_s29 = int_to_ptr.vmem [resolvable:$true] %s355_s29 }
  0x18   : > { %s5528_s24 = scalar_select %p4303_p3, 1, 0 }
  0x19   : > { %p3731_p4 = pneg %p4303_p3 }
  0x1b   : > { %p4311_p5 = pnand %p3731_p4, %p5516_p1 }
  0x1d   : > { %s3915_s13 = scalar_lea.hbm %s5530_s2, 2048  ;;  %p4327_p7 = pneg %p4311_p5 }
  0x1e   : > { %p3916_p6 = scmp.ne.s32.totalorder %s5530_s2, %s3915_s13  ;;  %p3922_p10 = scmp.lt.u32.totalorder %s3915_s13, %s5530_s2 }
  0x20   : > { %p3918_p8 = pnand %p4327_p7, %p3916_p6 }
  0x22   : > { %p3919_p9 = pneg %p3918_p8 }
  0x24   : > { %p3924_p11 = pnand %p3922_p10, %p3919_p9 }
  0x26   : > { %3927 = shalt.err (!%p3924_p11)
}
  0x27   : > { %s3928_s28 = scalar_lea.vmem %s4301_s22, 2048  ;;  %p3936_p2 = scmp.lt.s32.totalorder %s4301_s22, %s4301_s22 }
  0x28   : > { %p3929_p12 = scmp.ne.s32.totalorder %s4301_s22, %s3928_s28  ;;  %p3937_p4 = scmp.lt.s32.totalorder %s3928_s28, %s3928_s28 }
  0x2a   : > { %p3931_p13 = pnand %p3929_p12, %p4327_p7  ;;  %p3938_p6 = por %p3937_p4, %p3936_p2 }
  0x2c   : > { %p3932_p0 = pneg %p3931_p13 }
  0x2e   : > { %p3939_p8 = pnand %p3938_p6, %p3932_p0 }
  0x30   : > { %3942 = shalt.err (!%p3939_p8)
}
  0x31   : > { %s4202_s30 = smov 64   ;;  %s4203_s12 = smov 4  }
  0x32   : > { %3734 = dma.hbm_to_vmem [thread:$0]  (!%p4311_p5), %s5530_s2, 2048, %s4301_s22, [#allocation6], %s4202_s30, %s4202_s30, %s4203_s12  }
  0x33   : > { %s5532_s3 = sld [smem:[#allocation23_spill]] }
  0x39   : > { %s3943_s25 = scalar_lea.hbm %s5532_s3, 2048 }
  0x3a   : > { %p3944_p9 = scmp.ne.s32.totalorder %s5532_s3, %s3943_s25  ;;  %p3950_p12 = scmp.lt.u32.totalorder %s3943_s25, %s5532_s3 }
  0x3c   : > { %p3946_p10 = pnand %p3944_p9, %p4327_p7 }
  0x3e   : > { %p3947_p11 = pneg %p3946_p10 }
  0x40   : > { %p3952_p13 = pnand %p3950_p12, %p3947_p11 }
  0x42   : > { %3955 = shalt.err (!%p3952_p13)
}
  0x43   : > { %s3956_s22 = scalar_lea.vmem %s4315_s26, 2048  ;;  %p3964_p6 = scmp.lt.s32.totalorder %s4315_s26, %s4315_s26 }
  0x44   : > { %p3957_p0 = scmp.ne.s32.totalorder %s4315_s26, %s3956_s22  ;;  %p3965_p8 = scmp.lt.s32.totalorder %s3956_s22, %s3956_s22 }
  0x46   : > { %p3959_p2 = pnand %p3957_p0, %p4327_p7  ;;  %p3966_p9 = por %p3965_p8, %p3964_p6 }
  0x48   : > { %p3960_p4 = pneg %p3959_p2 }
  0x4a   : > { %p3967_p10 = pnand %p3966_p9, %p3960_p4 }
  0x4c   : > { %3970 = shalt.err (!%p3967_p10)
}
  0x4d   : > { %3737 = dma.hbm_to_vmem [thread:$0]  (!%p4311_p5), %s5532_s3, 2048, %s4315_s26, [#allocation9], %s4202_s30, %s4202_s30, %s4203_s12  }
  0x4e   : > { %s5533_s5 = sld [smem:[#allocation25_spill]] }
  0x54   : > { %s3971_s14 = scalar_lea.hbm %s5533_s5, 2048 }
  0x55   : > { %p3972_p11 = scmp.ne.s32.totalorder %s5533_s5, %s3971_s14  ;;  %p3978_p0 = scmp.lt.u32.totalorder %s3971_s14, %s5533_s5 }
  0x57   : > { %p3974_p12 = pnand %p3972_p11, %p4327_p7 }
  0x59   : > { %p3975_p13 = pneg %p3974_p12 }
  0x5b   : > { %p3980_p2 = pnand %p3978_p0, %p3975_p13 }
  0x5d   : > { %3983 = shalt.err (!%p3980_p2)
}
  0x5e   : > { %s3984_s26 = scalar_lea.vmem %s4317_s29, 2048  ;;  %p3992_p9 = scmp.lt.s32.totalorder %s4317_s29, %s4317_s29 }
  0x5f   : > { %p3985_p4 = scmp.ne.s32.totalorder %s4317_s29, %s3984_s26  ;;  %p3993_p10 = scmp.lt.s32.totalorder %s3984_s26, %s3984_s26 }
  0x61   : > { %p3987_p6 = pnand %p3985_p4, %p4327_p7  ;;  %p3994_p11 = por %p3993_p10, %p3992_p9 }
  0x63   : > { %p3988_p8 = pneg %p3987_p6 }
  0x65   : > { %p3995_p12 = pnand %p3994_p11, %p3988_p8 }
  0x67   : > { %3998 = shalt.err (!%p3995_p12)
}
  0x68   : > { %3743 = dma.hbm_to_vmem [thread:$0]  (!%p4311_p5), %s5533_s5, 2048, %s4317_s29, [#allocation12], %s4202_s30, %s4202_s30, %s4203_s12  }
  0x69   : > { %s4204_s10 = smov [#allocation10]   ;;  %s4205_s13 = smov [#allocation13]  }
  0x6a   : > { %s342_s11 = sshll.u32 %s4204_s10, 4  ;;  %s368_s14 = sshll.u32 %s4205_s13, 4  ;;  %s343_s11 = int_to_ptr.vmem [resolvable:$true] %s342_s11  ;;  %s369_s14 = int_to_ptr.vmem [resolvable:$true] %s368_s14 }
  0x6b   : > { %s5534_s4 = sld [smem:[#allocation24_spill]] }
  0x71   : > { %s3999_s25 = scalar_lea.hbm %s5534_s4, 2048 }
  0x72   : > { %p4000_p13 = scmp.ne.s32.totalorder %s5534_s4, %s3999_s25  ;;  %p4006_p4 = scmp.lt.u32.totalorder %s3999_s25, %s5534_s4 }
  0x74   : > { %p4002_p0 = pnand %p4000_p13, %p4327_p7 }
  0x76   : > { %p4003_p2 = pneg %p4002_p0 }
  0x78   : > { %p4008_p6 = pnand %p4006_p4, %p4003_p2 }
  0x7a   : > { %4011 = shalt.err (!%p4008_p6)
}
  0x7b   : > { %s4012_s29 = scalar_lea.vmem %s343_s11, 2048  ;;  %p4020_p11 = scmp.lt.s32.totalorder %s343_s11, %s343_s11 }
  0x7c   : > { %p4013_p8 = scmp.ne.s32.totalorder %s343_s11, %s4012_s29  ;;  %p4021_p12 = scmp.lt.s32.totalorder %s4012_s29, %s4012_s29 }
  0x7e   : > { %p4015_p9 = pnand %p4013_p8, %p4327_p7  ;;  %p4022_p1 = por %p4021_p12, %p4020_p11 }
  0x80   : > { %p4016_p10 = pneg %p4015_p9 }
  0x82   : > { %p4023_p3 = pnand %p4022_p1, %p4016_p10 }
  0x84   : > { %4026 = shalt.err (!%p4023_p3)
}
  0x85   : > { %3740 = dma.hbm_to_vmem [thread:$0]  (!%p4311_p5), %s5534_s4, 2048, %s343_s11, [#allocation9], %s4202_s30, %s4202_s30, %s4203_s12  }
  0x86   : > { %s4027_s15 = scalar_lea.hbm %s5507_s6, 2048 }
  0x87   : > { %p4028_p1 = scmp.ne.s32.totalorder %s5507_s6, %s4027_s15  ;;  %p4034_p0 = scmp.lt.u32.totalorder %s4027_s15, %s5507_s6 }
  0x89   : > { %p4030_p3 = pnand %p4028_p1, %p4327_p7 }
  0x8b   : > { %p4031_p13 = pneg %p4030_p3 }
  0x8d   : > { %p4036_p2 = pnand %p4034_p0, %p4031_p13 }
  0x8f   : > { %4039 = shalt.err (!%p4036_p2)
}
  0x90   : > { %s4040_s22 = scalar_lea.vmem %s369_s14, 2048  ;;  %p4048_p9 = scmp.lt.s32.totalorder %s369_s14, %s369_s14 }
  0x91   : > { %p4041_p4 = scmp.ne.s32.totalorder %s369_s14, %s4040_s22  ;;  %p4049_p10 = scmp.lt.s32.totalorder %s4040_s22, %s4040_s22 }
  0x93   : > { %p4043_p6 = pnand %p4041_p4, %p4327_p7  ;;  %p4050_p11 = por %p4049_p10, %p4048_p9 }
  0x95   : > { %p4044_p8 = pneg %p4043_p6 }
  0x97   : > { %p4051_p12 = pnand %p4050_p11, %p4044_p8 }
  0x99   : > { %4054 = shalt.err (!%p4051_p12)
}
  0x9a   : > { %3746 = dma.hbm_to_vmem [thread:$0]  (!%p4311_p5), %s5507_s6, 2048, %s369_s14, [#allocation12], %s4202_s30, %s4202_s30, %s4203_s12  }
  0x9b   : > { %s2862_s27 = sadd.s32 4294967294, %s4197_s20   ;;  %s4447_s16 = sadd.s32 1, %s4197_s20  }
  0x9c   : > { %s39_s2 = sadd.s32 1, %s4193_s19  ;;  %s36_s9 = ssub.s32 %s4197_s20, %s4447_s16 }
  0x9d   : > { %p46_p7 = scmp.ne.s32.totalorder %s4193_s19, %s4189_s18  ;;  %p37_p1 = scmp.eq.s32.totalorder %s36_s9, 0 }
  0x9e   : > { %p47_p3 = scmp.eq.s32.totalorder %s4197_s20, 0  ;;  %p52_p13 = scmp.ne.s32.totalorder %s4189_s18, %s4185_s17 }
  0x9f   : > { %p291_p0 = scmp.eq.s32.totalorder %s4296_s23, 3  ;;  %p5535_p4 = scmp.eq.s32.totalorder %s4296_s23, 0 }
  0xa0   : > { %s4459_s10 = scalar_select %p37_p1, %s4193_s19, %s39_s2  }
  0xa1   : > { %p48_p2 = por %p47_p3, %p46_p7  ;;  %p4463_p6 = por %p5535_p4, %p52_p13 }
  0xa2   : > { %p4467_p5 = por %p291_p0, %p46_p7  ;;  %p297_p8 = scmp.eq.s32.totalorder %s2862_s27, 3 }
  0xa3   : > { %p3763_p9 = scmp.lt.s32.totalorder %s4197_s20, 4  ;;  %s394_s14 = sand.u32 1, %s4193_s19  }
  0xa4   : > { %s5537_s12 = scalar_select %p4467_p5, 1, 0 }
  0xa5   : > { %p4473_p10 = por %p297_p8, %p52_p13  ;;  %s4477_s15 = smul.u32 72, %s394_s14 }
  0xa6   : > { %p4479_p11 = pnand %p3763_p9, %p48_p2  ;;  %s5518_s25 = smul.u32 1152, %s4197_s20 }
  0xa7   : > { %s5538_s13 = scalar_select %p4473_p10, 1, 0 }
  0xa8   : > { %s5540_s0 = sld [smem:[#allocation21_spill]]  ;;  %s398_s11 = scalar_lea.vmem [#allocation2], %s4477_s15 }
  0xa9   : > { %s406_s29 = sshll.u32 %s398_s11, 4  ;;  %s4494_s27 = scalar_lea.sflag [#allocation3], %s394_s14  ;;  %s4492_s29 = int_to_ptr.vmem [resolvable:$true] %s406_s29 }
  0xaa   : > { %p4057_p7 = pneg %p4479_p11 }
  0xae   : > { %s4489_s22 = scalar_lea.hbm %s5540_s0, %s5518_s25  ;;  %s4060_s26 = scalar_lea.hbm %s5540_s0, 4608 }
  0xaf   : > { %s4055_s2 = scalar_lea.hbm %s4489_s22, 1152  ;;  %p4061_p13 = scmp.lt.u32.totalorder %s4489_s22, %s5540_s0 }
  0xb0   : > { %p4056_p12 = scmp.ne.s32.totalorder %s4489_s22, %s4055_s2  ;;  %p4062_p0 = scmp.lt.u32.totalorder %s4060_s26, %s4055_s2 }
  0xb1   : > { %p4064_p4 = scmp.lt.u32.totalorder %s4055_s2, %s4489_s22 }
  0xb2   : > { %p4058_p1 = pnand %p4057_p7, %p4056_p12  ;;  %p4063_p2 = por %p4062_p0, %p4061_p13 }
  0xb4   : > { %p4059_p3 = pneg %p4058_p1  ;;  %p4065_p8 = por %p4064_p4, %p4063_p2 }
  0xb6   : > { %p4066_p9 = pnand %p4065_p8, %p4059_p3 }
  0xb8   : > { %4069 = shalt.err (!%p4066_p9)
}
  0xb9   : > { %s4070_s14 = scalar_lea.vmem %s4492_s29, 1152  ;;  %s4206_s11 = smov [#allocation2]  }
  0xba   : > { %p4071_p12 = scmp.ne.s32.totalorder %s4492_s29, %s4070_s14  ;;  %s4075_s9 = sshll.u32 %s4206_s11, 4  ;;  %s4076_s9 = int_to_ptr.vmem [resolvable:$false] %s4075_s9 }
  0xbb   : > { %s4077_s3 = scalar_lea.vmem %s4076_s9, 2304  ;;  %p4078_p5 = scmp.lt.s32.totalorder %s4492_s29, %s4076_s9 }
  0xbc   : > { %p4073_p1 = pnand %p4071_p12, %p4057_p7  ;;  %p4079_p13 = scmp.lt.s32.totalorder %s4077_s3, %s4070_s14 }
  0xbe   : > { %p4074_p10 = pneg %p4073_p1  ;;  %p4080_p0 = por %p4079_p13, %p4078_p5 }
  0xc0   : > { %p4081_p2 = pnand %p4080_p0, %p4074_p10 }
  0xc2   : > { %4084 = shalt.err (!%p4081_p2)
}
  0xc3   : > { %s4207_s25 = smov 128   ;;  %s4208_s2 = smov 8  }
  0xc4   : > { %3750 = dma.hbm_to_vmem [thread:$0]  (!%p4479_p11), %s4489_s22, 1152, %s4492_s29, %s4494_s27, %s4207_s25, %s4207_s25, %s4208_s2  }
  0xc5   : > { %s416_s28 = sand.u32 1, %s4197_s20   ;;  %s5541_s26 = smul.u32 1152, %s4197_s20 }
  0xc6   : > { %s420_s3 = scalar_lea.vmem [#allocation5], %s4477_s15  ;;  %s4536_s4 = scalar_lea.sflag [#allocation6], %s416_s28 }
  0xc7   : > { %s4531_s9 = scalar_lea.hbm %s5502_s1, %s5541_s26  ;;  %s428_s0 = sshll.u32 %s420_s3, 4  ;;  %s4534_s0 = int_to_ptr.vmem [resolvable:$true] %s428_s0 }
  0xc8   : > { %s4085_s5 = scalar_lea.hbm %s4531_s9, 1152  ;;  %s4090_s27 = scalar_lea.hbm %s5502_s1, 4608 }
  0xc9   : > { %p4086_p5 = scmp.ne.s32.totalorder %s4531_s9, %s4085_s5  ;;  %p4091_p4 = scmp.lt.u32.totalorder %s4531_s9, %s5502_s1 }
  0xca   : > { %p4092_p8 = scmp.lt.u32.totalorder %s4090_s27, %s4085_s5  ;;  %p4094_p12 = scmp.lt.u32.totalorder %s4085_s5, %s4531_s9 }
  0xcb   : > { %p4088_p10 = pnand %p4086_p5, %p4057_p7 }
  0xcc   : > { %p4093_p9 = por %p4092_p8, %p4091_p4 }
  0xcd   : > { %p4089_p3 = pneg %p4088_p10 }
  0xce   : > { %p4095_p1 = por %p4094_p12, %p4093_p9 }
  0xd0   : > { %p4096_p13 = pnand %p4095_p1, %p4089_p3 }
  0xd2   : > { %4099 = shalt.err (!%p4096_p13)
}
  0xd3   : > { %s4100_s15 = scalar_lea.vmem %s4534_s0, 1152  ;;  %s4209_s28 = smov [#allocation5]  }
  0xd4   : > { %p4101_p0 = scmp.ne.s32.totalorder %s4534_s0, %s4100_s15  ;;  %s4105_s11 = sshll.u32 %s4209_s28, 4  ;;  %s4106_s11 = int_to_ptr.vmem [resolvable:$false] %s4105_s11 }
  0xd5   : > { %s4107_s3 = scalar_lea.vmem %s4106_s11, 2304  ;;  %p4108_p10 = scmp.lt.s32.totalorder %s4534_s0, %s4106_s11 }
  0xd6   : > { %p4103_p2 = pnand %p4101_p0, %p4057_p7  ;;  %p4109_p4 = scmp.lt.s32.totalorder %s4107_s3, %s4100_s15 }
  0xd8   : > { %p4104_p5 = pneg %p4103_p2  ;;  %p4110_p8 = por %p4109_p4, %p4108_p10 }
  0xda   : > { %p4111_p9 = pnand %p4110_p8, %p4104_p5 }
  0xdc   : > { %4114 = shalt.err (!%p4111_p9)
}
  0xdd   : > { %3753 = dma.hbm_to_vmem [thread:$0]  (!%p4479_p11), %s4531_s9, 1152, %s4534_s0, %s4536_s4, %s4207_s25, %s4207_s25, %s4208_s2  }
  0xde   : > { %p5542_p7 = scmp.ne.s32.totalorder %s5528_s24, 0 }
  0xdf   : > { %s4568_s5 = sand.u32 (!%p5542_p7), 1, %s4189_s18  }
  0xe0   : > { %440 = sbr.rel (%p5542_p7) target bundleno = 1509 (0x5e5), region = 64  ;;  %s443_s29 = scalar_lea.sflag (!%p5542_p7), [#allocation3], %s4568_s5 }
  0xe1   : > { %s3703_s22 = smul.u32 (!%p5542_p7), 72, %s4568_s5 }
  0xe3   : > { %s4572_s27 = scalar_lea.vmem (!%p5542_p7), [#allocation2], %s3703_s22 }
  0xe7   : > { %4160 = dma.done.wait (%p4463_p6), %s443_s29, 1152  }
  0xe8   : > { %4162 = vsyncadd (%p4463_p6), %s443_s29, 4294966144  ;;  %s451_s0 = sand.u32 1, %s4296_s23   ;;  %s4579_s24 = scalar_lea.vmem [#allocation5], %s3703_s22 }
  0xe9   : > { %s452_s4 = scalar_lea.sflag [#allocation6], %s451_s0 }
  0xea   : > { %4164 = dma.done.wait (%p4463_p6), %s452_s4, 1152  }
  0xeb   : > { %4166 = vsyncadd (%p4463_p6), %s452_s4, 4294966144  ;;  %p5543_p11 = scmp.eq.s32.totalorder %s4296_s23, 0 }
  0xed   : > { %4168 = dma.done.wait (%p5543_p11), [#allocation6], 2048   ;;  %p5544_p3 = pmov %p5543_p11 }
  0xef   : > { %4170 = vsyncadd (%p5544_p3), [#allocation6], 4294965248  ;;  %p5545_p12 = pmov %p5544_p3 }
  0xf0   : > { %p5546_p1 = pmov %p5544_p3 }
  0xf1   : > { %4172 = dma.done.wait (%p5545_p12), [#allocation9], 4096  }
  0xf2   : > { %4174 = vsyncadd (%p5546_p1), [#allocation9], 4294963200  ;;  %p5547_p13 = pmov %p5546_p1 }
  0xf3   : > { %p5548_p0 = pmov %p5546_p1 }
  0xf4   : > { %4176 = dma.done.wait (%p5547_p13), [#allocation12], 4096  }
  0xf5   : > { %4178 = vsyncadd (%p5548_p0), [#allocation12], 4294963200  ;;  %v4210_v0 = vmov 0.0   ;;  %vm4211_vm0 = vmmov 0   ;;  %v3815_v1 = vld [vmem:[#allocation7] sm:$0xff]   ;;  %v3817_v3 = vld [vmem:[#allocation7 + $0x8] sm:$0xff]  }
  0xf6   : > { %3197 = vmatprep.subr.bf16.mxu0 %v4210_v0  ;;  %3233 = vmatprep.subr.bf16.mxu1 %v4210_v0  ;;  %v3816_v2 = vld [vmem:[#allocation8] sm:$0xff]   ;;  %v3818_v4 = vld [vmem:[#allocation8 + $0x8] sm:$0xff]   ;;  %v3819_v5 = vld [vmem:[#allocation7 + $0x10] sm:$0xff]   ;;  %s3704_s9 = smul.u32 288, %s4568_s5  ;;  %s5549_s15 = sld [smem:[#allocation26_spill]] }
  0xf7   : > { %3213 = vmatprep.mubr.msk.bf16.mxu0 %vm4211_vm0, %v4210_v0  ;;  %3249 = vmatprep.mubr.msk.bf16.mxu1 %vm4211_vm0, %v4210_v0  ;;  %v3820_v6 = vld [vmem:[#allocation8 + $0x10] sm:$0xff]   ;;  %v3821_v7 = vld [vmem:[#allocation7 + $0x18] sm:$0xff]   ;;  %v3823_v9 = vld [vmem:[#allocation7 + $0x20] sm:$0xff]   ;;  %s5550_s22 = sld [smem:[#allocation27_spill]]  ;;  %s3014_s2 = smul.u32 4608, %s4296_s23 }
  0xf8   : > { %3198 = vmatpush3.bf16.msra.mxu0 %v3815_v1  ;;  %3234 = vmatpush3.bf16.msra.mxu1 %v3816_v2  ;;  %v3822_v8 = vld [vmem:[#allocation8 + $0x18] sm:$0xff]   ;;  %v3824_v10 = vld [vmem:[#allocation8 + $0x20] sm:$0xff]   ;;  %v3825_v11 = vld [vmem:[#allocation7 + $0x28] sm:$0xff]   ;;  %s5059_s28 = scalar_lea.vmem [#allocation14], %s3704_s9  ;;  %s5554_s11 = sld [smem:[#allocation28_spill]] }
  0xf9   : > { %3199 = vmatprep.subr.bf16.mxu0 %v4210_v0  ;;  %3235 = vmatprep.subr.bf16.mxu1 %v4210_v0  ;;  %v3826_v12 = vld [vmem:[#allocation8 + $0x28] sm:$0xff]   ;;  %v3827_v13 = vld [vmem:[#allocation7 + $0x30] sm:$0xff]   ;;  %v3829_v15 = vld [vmem:[#allocation7 + $0x38] sm:$0xff]   ;;  %s2719_s9 = sshll.u32 %s5059_s28, 4  ;;  %s2705_s23 = scalar_lea.sflag [#allocation4], %s4568_s5  ;;  %s5457_s9 = int_to_ptr.vmem [resolvable:$true] %s2719_s9 }
  0xfa   : > { %v3828_v14 = vld [vmem:[#allocation8 + $0x30] sm:$0xff]   ;;  %v3830_v16 = vld [vmem:[#allocation8 + $0x38] sm:$0xff]   ;;  %v4616_v17 = vld [vmem:[%s4572_s27] sm:$0xf]  ;;  %s4115_s29 = scalar_lea.vmem %s5457_s9, 4608  ;;  %p5555_p2 = scmp.ne.s32.totalorder %s5537_s12, 0 }
  0xfb   : > { %v4619_v18 = vld [vmem:[%s4572_s27 + $0x8] sm:$0xf]  ;;  %v4622_v19 = vld [vmem:[%s4579_s24] sm:$0xf]  ;;  %v4626_v20 = vld [vmem:[%s4579_s24 + $0x8] sm:$0xf]  ;;  %p4116_p6 = scmp.ne.s32.totalorder %s5457_s9, %s4115_s29 }
  0xfc   : > { %3200 = vmatpush3.bf16.msra.mxu0 %v3817_v3  ;;  %3236 = vmatpush3.bf16.msra.mxu1 %v3818_v4  ;;  %v2880_v21 = vcombine.low %v4616_v17, %v4619_v18  ;;  %v2893_v22 = vcombine.low %v4622_v19, %v4626_v20  ;;  %v3833_v23 = vld [vmem:[#allocation10] sm:$0xff]   ;;  %v3834_v24 = vld [vmem:[#allocation10 + $0x8] sm:$0xff]   ;;  %v4635_v25 = vld [vmem:[%s4572_s27 + $0x10] sm:$0xf]  ;;  %v869_v58 = vadd.bf16 %v4622_v19, %v4616_v17 }
  0xfd   : > { %3201 = vmatprep.subr.bf16.mxu0 %v4210_v0  ;;  %3237 = vmatprep.subr.bf16.mxu1 %v4210_v0  ;;  %v4638_v26 = vld [vmem:[%s4572_s27 + $0x18] sm:$0xf]  ;;  %v4644_v28 = vld [vmem:[%s4579_s24 + $0x10] sm:$0xf]  ;;  %v4647_v29 = vld [vmem:[%s4579_s24 + $0x18] sm:$0xf]  ;;  %v870_v59 = vadd.bf16 %v4626_v20, %v4619_v18  ;;  %p4117_p5 = pnand %p4116_p6, %p5555_p2 }
  0xfe   : > { %v4641_v27 = vld [vmem:[#allocation11] sm:$0xff]   ;;  %v4649_v30 = vld [vmem:[#allocation11 + $0x8] sm:$0xff]   ;;  %v3837_v31 = vld [vmem:[#allocation10 + $0x10] sm:$0xff]   ;;  %v2881_v32 = vcombine.low %v4635_v25, %v4638_v26  ;;  %v2894_v33 = vcombine.low %v4644_v28, %v4647_v29  ;;  %v871_v61 = vadd.bf16 %v4644_v28, %v4635_v25  ;;  %v872_v62 = vadd.bf16 %v4647_v29, %v4638_v26  ;;  %s5455_s3 = scalar_lea.hbm %s5554_s11, %s3014_s2 }
  0xff   : > { %v4662_v34 = vld [vmem:[#allocation11 + $0x10] sm:$0xff]   ;;  %v4666_v35 = vld [vmem:[%s4572_s27 + $0x20] sm:$0xf]  ;;  %v3840_v37 = vld [vmem:[#allocation10 + $0x18] sm:$0xff]   ;;  %v2906_v60 = vcombine.low %v869_v58, %v870_v59  ;;  %p4118_p10 = pneg %p4117_p5 }
 0x100   : > { %3202 = vmatpush3.bf16.msra.mxu0 %v3819_v5  ;;  %3238 = vmatpush3.bf16.msra.mxu1 %v3820_v6  ;;  %v4669_v36 = vld [vmem:[%s4572_s27 + $0x28] sm:$0xf]  ;;  %v4673_v38 = vld [vmem:[%s4579_s24 + $0x20] sm:$0xf]  ;;  %v4676_v39 = vld [vmem:[%s4579_s24 + $0x28] sm:$0xf]  ;;  %v2907_v63 = vcombine.low %v871_v61, %v872_v62 }
 0x101   : > { %3203 = vmatprep.subr.bf16.mxu0 %v4210_v0  ;;  %3239 = vmatprep.subr.bf16.mxu1 %v4210_v0  ;;  %v4679_v40 = vld [vmem:[#allocation11 + $0x18] sm:$0xff]   ;;  %v3841_v41 = vld [vmem:[#allocation10 + $0x20] sm:$0xff]   ;;  %v2882_v42 = vcombine.low %v4666_v35, %v4669_v36  ;;  %v2895_v43 = vcombine.low %v4673_v38, %v4676_v39  ;;  %v3844_v47 = vld [vmem:[#allocation10 + $0x28] sm:$0xff]   ;;  %v873_v1 = vadd.bf16 %v4673_v38, %v4666_v35 }
 0x102   : > { %v4692_v44 = vld [vmem:[#allocation11 + $0x20] sm:$0xff]   ;;  %v529_v45 = vld [vmem:[%s4572_s27 + $0x30] sm:$0xf]  ;;  %v539_v49 = vld [vmem:[%s4579_s24 + $0x38] sm:$0xf]  ;;  %v874_v2 = vadd.bf16 %v4676_v39, %v4669_v36 }
 0x103   : > { %v530_v46 = vld [vmem:[%s4572_s27 + $0x38] sm:$0xf]  ;;  %v538_v48 = vld [vmem:[%s4579_s24 + $0x30] sm:$0xf]  ;;  %v3845_v51 = vld [vmem:[#allocation10 + $0x30] sm:$0xff]  }
 0x104   : > { %3204 = vmatpush3.bf16.msra.mxu0 %v3821_v7  ;;  %3240 = vmatpush3.bf16.msra.mxu1 %v3822_v8  ;;  %v2883_v50 = vcombine.low %v529_v45, %v530_v46  ;;  %v2896_v52 = vcombine.low %v538_v48, %v539_v49  ;;  %v531_v53 = vld [vmem:[%s4572_s27 + $0x40] sm:$0xf]  ;;  %v540_v54 = vld [vmem:[%s4579_s24 + $0x40] sm:$0xf]  ;;  %v2908_v3 = vcombine.low %v873_v1, %v874_v2 }
 0x105   : > { %3205 = vmatprep.subr.bf16.mxu0 %v4210_v0  ;;  %3241 = vmatprep.subr.bf16.mxu1 %v4210_v0  ;;  %v3848_v55 = vld [vmem:[#allocation10 + $0x38] sm:$0xff]   ;;  %v2884_v56 = vcombine.low %v531_v53, %v531_v53  ;;  %v2897_v57 = vcombine.low %v540_v54, %v540_v54  ;;  %v875_v4 = vadd.bf16 %v538_v48, %v529_v45  ;;  %v4774_v17 = vld [vmem:[#allocation13 + $0x28] sm:$0xff]   ;;  %v4779_v18 = vld [vmem:[#allocation13 + $0x30] sm:$0xff]  }
 0x106   : > { %v876_v5 = vadd.bf16 %v539_v49, %v530_v46  ;;  %v877_v7 = vadd.bf16 %v540_v54, %v531_v53  ;;  %v4783_v19 = vld [vmem:[#allocation13 + $0x38] sm:$0xff]  }
 0x108   : > { %3206 = vmatpush3.bf16.msra.mxu0 %v3823_v9  ;;  %3242 = vmatpush3.bf16.msra.mxu1 %v3824_v10  ;;  %v2909_v6 = vcombine.low %v875_v4, %v876_v5  ;;  %v2910_v8 = vcombine.low %v877_v7, %v877_v7  ;;  %v4743_v9 = vld [vmem:[#allocation11 + $0x28] sm:$0xff]   ;;  %v4747_v10 = vld [vmem:[#allocation11 + $0x30] sm:$0xff]  }
 0x109   : > { %3207 = vmatprep.subr.bf16.mxu0 %v4210_v0  ;;  %3243 = vmatprep.subr.bf16.mxu1 %v4210_v0 }
 0x10c   : > { %3208 = vmatpush3.bf16.msra.mxu0 %v3825_v11  ;;  %3244 = vmatpush3.bf16.msra.mxu1 %v3826_v12  ;;  %v4751_v11 = vld [vmem:[#allocation11 + $0x38] sm:$0xff]   ;;  %v4755_v12 = vld [vmem:[#allocation13] sm:$0xff]  }
 0x10d   : > { %3209 = vmatprep.subr.bf16.mxu0 %v4210_v0  ;;  %3245 = vmatprep.subr.bf16.mxu1 %v4210_v0 }
 0x110   : > { %3210 = vmatpush3.bf16.msra.mxu0 %v3827_v13  ;;  %3246 = vmatpush3.bf16.msra.mxu1 %v3828_v14  ;;  %v4759_v13 = vld [vmem:[#allocation13 + $0x8] sm:$0xff]   ;;  %v4763_v14 = vld [vmem:[#allocation13 + $0x10] sm:$0xff]  }
 0x111   : > { %3211 = vmatprep.subr.bf16.mxu0 %v4210_v0  ;;  %3247 = vmatprep.subr.bf16.mxu1 %v4210_v0 }
 0x114   : > { %3212 = vmatpush3.bf16.msra.mxu0 %v3829_v15  ;;  %3248 = vmatpush3.bf16.msra.mxu1 %v3830_v16  ;;  %v4767_v15 = vld [vmem:[#allocation13 + $0x18] sm:$0xff]   ;;  %v4771_v16 = vld [vmem:[#allocation13 + $0x20] sm:$0xff]  }
 0x115   : > { %3269 = vmatprep.subr.bf16.mxu0 %v4210_v0  ;;  %3305 = vmatprep.subr.bf16.mxu1 %v4210_v0 }
 0x117   : > { %3214 = vmatmul.mubr.bf16.vlgmr.msra.gmra.mrb[0].mxu0 %v2880_v21  ;;  %3250 = vmatmul.mubr.bf16.vlgmr.msra.gmra.mrb[0].mxu1 %v2893_v22  ;;  %v4794_v22 = vld [vmem:[%s5508_s7] ss:$0 sm:$0xff] }
 0x118   : > { %3270 = vmatpush3.bf16.msra.mxu0 %v3833_v23  ;;  %3217 = vmatprep.mubr.msk.bf16.mxu0 %vm4211_vm0, %v4210_v0 }
 0x119   : > { %3271 = vmatprep.subr.bf16.mxu0 %v4210_v0  ;;  %3253 = vmatprep.mubr.msk.bf16.mxu1 %vm4211_vm0, %v4210_v0 }
 0x11a   : > { %3306 = vmatpush3.bf16.msra.mxu1 %v4641_v27 }
 0x11b   : > { %3307 = vmatprep.subr.bf16.mxu1 %v4210_v0 }
 0x11c   : > { %3272 = vmatpush3.bf16.msra.mxu0 %v3834_v24 }
 0x11d   : > { %3273 = vmatprep.subr.bf16.mxu0 %v4210_v0 }
 0x11e   : > { %3308 = vmatpush3.bf16.msra.mxu1 %v4649_v30 }
 0x11f   : > { %3218 = vmatmul.mubr.bf16.gmra.mrb[4].mxu0 %v2881_v32  ;;  %3309 = vmatprep.subr.bf16.mxu1 %v4210_v0 }
 0x120   : > { %3254 = vmatmul.mubr.bf16.gmra.mrb[4].mxu1 %v2894_v33  ;;  %3274 = vmatpush3.bf16.msra.mxu0 %v3837_v31 }
 0x121   : > { %3221 = vmatprep.mubr.msk.bf16.mxu0 %vm4211_vm0, %v4210_v0  ;;  %3257 = vmatprep.mubr.msk.bf16.mxu1 %vm4211_vm0, %v4210_v0 }
 0x122   : > { %3275 = vmatprep.subr.bf16.mxu0 %v4210_v0  ;;  %3310 = vmatpush3.bf16.msra.mxu1 %v4662_v34 }
 0x123   : > { %3311 = vmatprep.subr.bf16.mxu1 %v4210_v0 }
 0x124   : > { %3276 = vmatpush3.bf16.msra.mxu0 %v3840_v37 }
 0x125   : > { %3277 = vmatprep.subr.bf16.mxu0 %v4210_v0 }
 0x126   : > { %3312 = vmatpush3.bf16.msra.mxu1 %v4679_v40 }
 0x127   : > { %3222 = vmatmul.mubr.bf16.gmra.mrb[8].mxu0 %v2882_v42  ;;  %3313 = vmatprep.subr.bf16.mxu1 %v4210_v0 }
 0x128   : > { %3258 = vmatmul.mubr.bf16.gmra.mrb[8].mxu1 %v2895_v43  ;;  %3278 = vmatpush3.bf16.msra.mxu0 %v3841_v41 }
 0x129   : > { %3225 = vmatprep.mubr.msk.bf16.mxu0 %vm4211_vm0, %v4210_v0  ;;  %3261 = vmatprep.mubr.msk.bf16.mxu1 %vm4211_vm0, %v4210_v0 }
 0x12a   : > { %3279 = vmatprep.subr.bf16.mxu0 %v4210_v0  ;;  %3314 = vmatpush3.bf16.msra.mxu1 %v4692_v44 }
 0x12b   : > { %3315 = vmatprep.subr.bf16.mxu1 %v4210_v0 }
 0x12c   : > { %3280 = vmatpush3.bf16.msra.mxu0 %v3844_v47 }
 0x12d   : > { %3281 = vmatprep.subr.bf16.mxu0 %v4210_v0 }
 0x12e   : > { %3316 = vmatpush3.bf16.msra.mxu1 %v4743_v9 }
 0x12f   : > { %3226 = vmatmul.mubr.bf16.gmra.mrb[12].mxu0 %v2883_v50  ;;  %3317 = vmatprep.subr.bf16.mxu1 %v4210_v0 }
 0x130   : > { %3262 = vmatmul.mubr.bf16.gmra.mrb[12].mxu1 %v2896_v52  ;;  %3229 = vmatprep.mubr.msk.bf16.mxu0 %vm4211_vm0, %v4210_v0 }
 0x131   : > { %3282 = vmatpush3.bf16.msra.mxu0 %v3845_v51  ;;  %3265 = vmatprep.mubr.msk.bf16.mxu1 %vm4211_vm0, %v4210_v0 }
 0x132   : > { %3283 = vmatprep.subr.bf16.mxu0 %v4210_v0  ;;  %3318 = vmatpush3.bf16.msra.mxu1 %v4747_v10 }
 0x133   : > { %3319 = vmatprep.subr.bf16.mxu1 %v4210_v0 }
 0x135   : > { %3284 = vmatpush3.bf16.msra.mxu0 %v3848_v55 }
 0x136   : > { %3341 = vmatprep.subr.bf16.mxu0 %v4210_v0  ;;  %3320 = vmatpush3.bf16.msra.mxu1 %v4751_v11 }
 0x137   : > { %3230 = vmatmul.mubr.bf16.gmra.mrb[16].mxu0 %v2884_v56  ;;  %3377 = vmatprep.subr.bf16.mxu1 %v4210_v0 }
 0x138   : > { %3266 = vmatmul.mubr.bf16.gmra.mrb[16].mxu1 %v2897_v57  ;;  %3285 = vmatprep.mubr.msk.bf16.mxu0 %vm4211_vm0, %v4210_v0 }
 0x139   : > { %3321 = vmatprep.mubr.msk.bf16.mxu1 %vm4211_vm0, %v4210_v0 }
 0x13f   : > { %3286 = vmatmul.mubr.bf16.vlgmr.msra.gmra.mrb[20].mxu0 %v2906_v60 }
 0x140   : > { %3289 = vmatprep.mubr.msk.bf16.mxu0 %vm4211_vm0, %v4210_v0  ;;  %3342 = vmatpush3.bf16.msra.mxu0 %v4755_v12 }
 0x141   : > { %3343 = vmatprep.subr.bf16.mxu0 %v4210_v0 }
 0x144   : > { %3344 = vmatpush3.bf16.msra.mxu0 %v4759_v13 }
 0x145   : > { %3345 = vmatprep.subr.bf16.mxu0 %v4210_v0 }
 0x147   : > { %3290 = vmatmul.mubr.bf16.gmra.mrb[24].mxu0 %v2907_v63 }
 0x148   : > { %3293 = vmatprep.mubr.msk.bf16.mxu0 %vm4211_vm0, %v4210_v0  ;;  %3346 = vmatpush3.bf16.msra.mxu0 %v4763_v14 }
 0x149   : > { %3347 = vmatprep.subr.bf16.mxu0 %v4210_v0 }
 0x14c   : > { %3348 = vmatpush3.bf16.msra.mxu0 %v4767_v15 }
 0x14d   : > { %3349 = vmatprep.subr.bf16.mxu0 %v4210_v0 }
 0x14f   : > { %3294 = vmatmul.mubr.bf16.gmra.mrb[28].mxu0 %v2908_v3 }
 0x150   : > { %3297 = vmatprep.mubr.msk.bf16.mxu0 %vm4211_vm0, %v4210_v0  ;;  %3350 = vmatpush3.bf16.msra.mxu0 %v4771_v16 }
 0x151   : > { %3351 = vmatprep.subr.bf16.mxu0 %v4210_v0 }
 0x154   : > { %3352 = vmatpush3.bf16.msra.mxu0 %v4774_v17 }
 0x155   : > { %3353 = vmatprep.subr.bf16.mxu0 %v4210_v0 }
 0x157   : > { %3298 = vmatmul.mubr.bf16.gmra.mrb[32].mxu0 %v2909_v6 }
 0x158   : > { %3301 = vmatprep.mubr.msk.bf16.mxu0 %vm4211_vm0, %v4210_v0  ;;  %3354 = vmatpush3.bf16.msra.mxu0 %v4779_v18 }
 0x159   : > { %3355 = vmatprep.subr.bf16.mxu0 %v4210_v0 }
 0x15c   : > { %3356 = vmatpush3.bf16.msra.mxu0 %v4783_v19 }
 0x15d   : > { %3413 = vmatprep.subr.bf16.mxu0 %v4210_v0 }
 0x15f   : > { %3302 = vmatmul.mubr.bf16.gmra.mrb[36].mxu0 %v2910_v8 }
 0x160   : > { %3357 = vmatprep.mubr.msk.bf16.mxu0 %vm4211_vm0, %v4210_v0 }
 0x1ea   : > { %v4787_v20 = vpop.f32.mrb[0].mxu0  ;;  %v4789_v21 = vpop.f32.mrb[0].mxu1 }
 0x1eb   : > { %v3215_v23 = vpop.f32.mrb[1].mxu0  ;;  %v1042_v24 = vsub.f32 %v4787_v20, %v4789_v21  ;;  %v3251_v25 = vpop.f32.mrb[1].mxu1 }
 0x1ec   : > { %v4798_v26 = vpop.f32.mrb[2].mxu0  ;;  %v4800_v28 = vpop.f32.mrb[2].mxu1 }
 0x1ed   : > { %v3216_v29 = vpop.f32.mrb[3].mxu0  ;;  %v1058_v31 = vadd.f32 %v4794_v22, %v1042_v24  ;;  %v1043_v32 = vsub.f32 %v4798_v26, %v4800_v28  ;;  %v3252_v33 = vpop.f32.mrb[3].mxu1 }
 0x1ef   : > { %v1059_v35 = vadd.f32 %v4794_v22, %v1043_v32  ;;  %v1067_v36 = vmax.f32 %v1058_v31, 0.0 }
 0x1f1   : > { %v1068_v37 = vmax.f32 %v1059_v35, 0.0 }
 0x1f2   : > { %v4806_v38 = vpop.f32.mrb[4].mxu0 }
 0x1f3   : > { %v4808_v39 = vpop.f32.mrb[4].mxu1  ;;  %v3219_v41 = vpop.f32.mrb[5].mxu0  ;;  %v1119_v42 = vpack.c.bf16 %v1068_v37, %v1067_v36 }
 0x1f4   : > { %v1044_v43 = vsub.f32 %v4806_v38, %v4808_v39  ;;  %v3255_v45 = vpop.f32.mrb[5].mxu1  ;;  %v4812_v46 = vpop.f32.mrb[6].mxu0 }
 0x1f5   : > { %v4814_v47 = vpop.f32.mrb[6].mxu1  ;;  %v3220_v48 = vpop.f32.mrb[7].mxu0  ;;  %3322 = vmatmul.mubr.bf16.vlgmr.msra.gmra.mrb[20].mxu1 %v1119_v42 }
 0x1f6   : > { %v1060_v49 = vadd.f32 %v4794_v22, %v1044_v43  ;;  %v1045_v50 = vsub.f32 %v4812_v46, %v4814_v47  ;;  %v3256_v51 = vpop.f32.mrb[7].mxu1  ;;  %3325 = vmatprep.mubr.msk.bf16.mxu1 %vm4211_vm0, %v4210_v0  ;;  %3378 = vmatpush3.bf16.msra.mxu1 %v4641_v27 }
 0x1f7   : > { %3379 = vmatprep.subr.bf16.mxu1 %v4210_v0 }
 0x1f8   : > { %v1061_v52 = vadd.f32 %v4794_v22, %v1045_v50  ;;  %v1069_v53 = vmax.f32 %v1060_v49, 0.0 }
 0x1fa   : > { %v1070_v54 = vmax.f32 %v1061_v52, 0.0  ;;  %v4824_v55 = vpop.f32.mrb[8].mxu0  ;;  %3380 = vmatpush3.bf16.msra.mxu1 %v4649_v30 }
 0x1fb   : > { %v4826_v56 = vpop.f32.mrb[8].mxu1  ;;  %v3223_v57 = vpop.f32.mrb[9].mxu0  ;;  %3381 = vmatprep.subr.bf16.mxu1 %v4210_v0 }
 0x1fc   : > { %v1046_v58 = vsub.f32 %v4824_v55, %v4826_v56  ;;  %v3259_v59 = vpop.f32.mrb[9].mxu1  ;;  %v4831_v60 = vpop.f32.mrb[10].mxu0  ;;  %v1120_v27 = vpack.c.bf16 %v1070_v54, %v1069_v53 }
 0x1fd   : > { %v4834_v61 = vpop.f32.mrb[10].mxu1  ;;  %v3224_v62 = vpop.f32.mrb[11].mxu0 }
 0x1fe   : > { %v1062_v63 = vadd.f32 %v4794_v22, %v1046_v58  ;;  %v1047_v1 = vsub.f32 %v4831_v60, %v4834_v61  ;;  %3326 = vmatmul.mubr.bf16.gmra.mrb[24].mxu1 %v1120_v27  ;;  %v3260_v2 = vpop.f32.mrb[11].mxu1 }
 0x1ff   : > { %3329 = vmatprep.mubr.msk.bf16.mxu1 %vm4211_vm0, %v4210_v0  ;;  %3382 = vmatpush3.bf16.msra.mxu1 %v4662_v34 }
 0x200   : > { %v1063_v30 = vadd.f32 %v4794_v22, %v1047_v1  ;;  %3383 = vmatprep.subr.bf16.mxu1 %v4210_v0  ;;  %v1071_v3 = vmax.f32 %v1062_v63, 0.0 }
 0x202   : > { %v1072_v4 = vmax.f32 %v1063_v30, 0.0  ;;  %v4844_v5 = vpop.f32.mrb[12].mxu0 }
 0x203   : > { %v4846_v6 = vpop.f32.mrb[12].mxu1  ;;  %v3227_v7 = vpop.f32.mrb[13].mxu0  ;;  %3384 = vmatpush3.bf16.msra.mxu1 %v4679_v40 }
 0x204   : > { %v1048_v8 = vsub.f32 %v4844_v5, %v4846_v6  ;;  %v3263_v23 = vpop.f32.mrb[13].mxu1  ;;  %v4851_v24 = vpop.f32.mrb[14].mxu0  ;;  %v1121_v34 = vpack.c.bf16 %v1072_v4, %v1071_v3  ;;  %3385 = vmatprep.subr.bf16.mxu1 %v4210_v0 }
 0x205   : > { %v4854_v25 = vpop.f32.mrb[14].mxu1  ;;  %v3228_v29 = vpop.f32.mrb[15].mxu0 }
 0x206   : > { %v1064_v31 = vadd.f32 %v4794_v22, %v1048_v8  ;;  %v1049_v32 = vsub.f32 %v4851_v24, %v4854_v25  ;;  %3330 = vmatmul.mubr.bf16.gmra.mrb[28].mxu1 %v1121_v34  ;;  %v3264_v33 = vpop.f32.mrb[15].mxu1  ;;  %v3865_v34 = vld [vmem:[#allocation7 + $0x40] sm:$0xff]  }
 0x207   : > { %3333 = vmatprep.mubr.msk.bf16.mxu1 %vm4211_vm0, %v4210_v0  ;;  %3386 = vmatpush3.bf16.msra.mxu1 %v4692_v44 }
 0x208   : > { %v1065_v40 = vadd.f32 %v4794_v22, %v1049_v32  ;;  %3387 = vmatprep.subr.bf16.mxu1 %v4210_v0  ;;  %v1073_v35 = vmax.f32 %v1064_v31, 0.0 }
 0x20a   : > { %v1074_v36 = vmax.f32 %v1065_v40, 0.0  ;;  %v4864_v37 = vpop.f32.mrb[16].mxu0 }
 0x20b   : > { %v3231_v41 = vpop.f32.mrb[17].mxu0  ;;  %v4866_v42 = vpop.f32.mrb[16].mxu1  ;;  %3388 = vmatpush3.bf16.msra.mxu1 %v4743_v9 }
 0x20c   : > { %v1050_v43 = vsub.f32 %v4864_v37, %v4866_v42  ;;  %v702_v45 = vpop.f32.mrb[18].mxu0  ;;  %v1122_v48 = vpack.c.bf16 %v1074_v36, %v1073_v35  ;;  %3389 = vmatprep.subr.bf16.mxu1 %v4210_v0  ;;  %v3267_v44 = vpop.f32.mrb[17].mxu1 }
 0x20d   : > { %v3232_v49 = vpop.f32.mrb[19].mxu0  ;;  %v866_v50 = vpop.f32.mrb[18].mxu1  ;;  %v3867_v45 = vld [vmem:[#allocation7 + $0x50] sm:$0xff]  }
 0x20e   : > { %v1066_v51 = vadd.f32 %v4794_v22, %v1050_v43  ;;  %3334 = vmatmul.mubr.bf16.gmra.mrb[32].mxu1 %v1122_v48  ;;  %v3268_v52 = vpop.f32.mrb[19].mxu1  ;;  %v4882_v22 = vld [vmem:[%s5509_s8] ss:$0 sm:$0xff] }
 0x20f   : > { %3337 = vmatprep.mubr.msk.bf16.mxu1 %vm4211_vm0, %v4210_v0  ;;  %3390 = vmatpush3.bf16.msra.mxu1 %v4747_v10 }
 0x210   : > { %v1075_v9 = vmax.f32 %v1066_v51, 0.0  ;;  %3391 = vmatprep.subr.bf16.mxu1 %v4210_v0 }
 0x212   : > { %v1004_v53 = vpop.f32.mrb[20].mxu0  ;;  %v1123_v59 = vpack.c.bf16 %v1075_v9, %v1075_v9 }
 0x213   : > { %v1076_v54 = vsub.f32 %v1004_v53, %v4787_v20  ;;  %v3287_v57 = vpop.f32.mrb[21].mxu0  ;;  %3392 = vmatpush3.bf16.msra.mxu1 %v4751_v11 }
 0x214   : > { %v1007_v58 = vpop.f32.mrb[22].mxu0  ;;  %3449 = vmatprep.subr.bf16.mxu1 %v4210_v0 }
 0x215   : > { %v1085_v10 = vsub.f32 %v1076_v54, %v4789_v21  ;;  %v1077_v27 = vsub.f32 %v1007_v58, %v4798_v26  ;;  %v3288_v62 = vpop.f32.mrb[23].mxu0  ;;  %v3869_v54 = vld [vmem:[#allocation7 + $0x60] sm:$0xff]  }
 0x216   : > { %3338 = vmatmul.mubr.bf16.gmra.mrb[36].mxu1 %v1123_v59 }
 0x217   : > { %v1101_v20 = vadd.f32 %v4882_v22, %v1085_v10  ;;  %v1086_v63 = vsub.f32 %v1077_v27, %v4800_v28  ;;  %3393 = vmatprep.mubr.msk.bf16.mxu1 %vm4211_vm0, %v4210_v0 }
 0x219   : > { %v1102_v11 = vadd.f32 %v4882_v22, %v1086_v63  ;;  %v1110_v2 = vmax.f32 %v1101_v20, 0.0 }
 0x21a   : > { %v1012_v1 = vpop.f32.mrb[24].mxu0 }
 0x21b   : > { %v1111_v30 = vmax.f32 %v1102_v11, 0.0  ;;  %v1078_v3 = vsub.f32 %v1012_v1, %v4806_v38  ;;  %v3291_v4 = vpop.f32.mrb[25].mxu0  ;;  %v1611_v11 = vld [vmem:[%s4572_s27 + $0x14] sm:$0xf]  ;;  %v1612_v1 = vld [vmem:[%s4572_s27 + $0x1c] sm:$0xf] }
 0x21c   : > { %v1015_v21 = vpop.f32.mrb[26].mxu0  ;;  %v1613_v4 = vld [vmem:[%s4572_s27 + $0x24] sm:$0xf] }
 0x21d   : > { %v1124_v7 = vpack.c.bf16 %v1111_v30, %v1110_v2  ;;  %v1087_v26 = vsub.f32 %v1078_v3, %v4808_v39  ;;  %v1079_v8 = vsub.f32 %v1015_v21, %v4812_v46  ;;  %v3292_v23 = vpop.f32.mrb[27].mxu0  ;;  %v3866_v39 = vld [vmem:[#allocation7 + $0x48] sm:$0xff]   ;;  %v2940_v2 = vcombine.low %v1611_v11, %v1612_v1  ;;  %v3875_v30 = vld [vmem:[#allocation10 + $0x40] sm:$0xff]  }
 0x21e   : > { %v3876_v3 = vld [vmem:[#allocation10 + $0x48] sm:$0xff]   ;;  %v1615_v23 = vld [vmem:[%s4572_s27 + $0x34] sm:$0xf] }
 0x21f   : > { %v1103_v28 = vadd.f32 %v4882_v22, %v1087_v26  ;;  %v1088_v29 = vsub.f32 %v1079_v8, %v4814_v47  ;;  %3358 = vmatmul.mubr.bf16.vlgmr.msra.gmra.mrb[40].mxu0 %v1124_v7  ;;  %3394 = vmatmul.mubr.bf16.vlgmr.msra.gmra.mrb[40].mxu1 %v1124_v7  ;;  %v1614_v21 = vld [vmem:[%s4572_s27 + $0x2c] sm:$0xf]  ;;  %v3879_v8 = vld [vmem:[#allocation10 + $0x58] sm:$0xff]  }
 0x220   : > { %3361 = vmatprep.mubr.msk.bf16.mxu0 %vm4211_vm0, %v4210_v0  ;;  %3397 = vmatprep.mubr.msk.bf16.mxu1 %vm4211_vm0, %v4210_v0  ;;  %v2941_v7 = vcombine.low %v1613_v4, %v1614_v21  ;;  %v3878_v26 = vld [vmem:[#allocation10 + $0x50] sm:$0xff]  }
 0x221   : > { %v1104_v38 = vadd.f32 %v4882_v22, %v1088_v29  ;;  %3450 = vmatpush3.bf16.msra.mxu1 %v3865_v34  ;;  %3414 = vmatpush3.bf16.msra.mxu0 %v4755_v12  ;;  %v1112_v47 = vmax.f32 %v1103_v28, 0.0  ;;  %v1616_v34 = vld [vmem:[%s4572_s27 + $0x3c] sm:$0xf] }
 0x222   : > { %v1020_v46 = vpop.f32.mrb[28].mxu0  ;;  %3451 = vmatprep.subr.bf16.mxu1 %v4210_v0  ;;  %3415 = vmatprep.subr.bf16.mxu0 %v4210_v0  ;;  %v2942_v28 = vcombine.low %v1615_v23, %v1616_v34  ;;  %v3881_v29 = vld [vmem:[#allocation10 + $0x60] sm:$0xff]  }
 0x223   : > { %v1113_v31 = vmax.f32 %v1104_v38, 0.0  ;;  %v1080_v32 = vsub.f32 %v1020_v46, %v4824_v55  ;;  %v3295_v33 = vpop.f32.mrb[29].mxu0  ;;  %v3882_v38 = vld [vmem:[#allocation10 + $0x68] sm:$0xff]  }
 0x224   : > { %v1023_v40 = vpop.f32.mrb[30].mxu0  ;;  %v4987_v33 = vld [vmem:[%s4579_s24 + $0xc] sm:$0xf] }
 0x225   : > { %v1089_v35 = vsub.f32 %v1080_v32, %v4826_v56  ;;  %v1081_v36 = vsub.f32 %v1023_v40, %v4831_v60  ;;  %v3296_v41 = vpop.f32.mrb[31].mxu0  ;;  %v1125_v43 = vpack.c.bf16 %v1113_v31, %v1112_v47  ;;  %3452 = vmatpush3.bf16.msra.mxu1 %v3866_v39  ;;  %3416 = vmatpush3.bf16.msra.mxu0 %v4759_v13  ;;  %v3868_v13 = vld [vmem:[#allocation7 + $0x58] sm:$0xff]   ;;  %v1617_v39 = vld [vmem:[%s4572_s27 + $0x44] sm:$0xf]  ;;  %v3884_v47 = vld [vmem:[#allocation10 + $0x70] sm:$0xff]  }
 0x226   : > { %3453 = vmatprep.subr.bf16.mxu1 %v4210_v0  ;;  %3417 = vmatprep.subr.bf16.mxu0 %v4210_v0  ;;  %v2943_v46 = vcombine.low %v1617_v39, %v1617_v39  ;;  %v3885_v31 = vld [vmem:[#allocation10 + $0x78] sm:$0xff]   ;;  %v4995_v41 = vld [vmem:[%s4579_s24 + $0x14] sm:$0xf] }
 0x227   : > { %v1105_v12 = vadd.f32 %v4882_v22, %v1089_v35  ;;  %v1090_v55 = vsub.f32 %v1081_v36, %v4834_v61  ;;  %3362 = vmatmul.mubr.bf16.gmra.mrb[44].mxu0 %v1125_v43  ;;  %3398 = vmatmul.mubr.bf16.gmra.mrb[44].mxu1 %v1125_v43  ;;  %v4984_v32 = vld [vmem:[%s4579_s24 + $0x4] sm:$0xf]  ;;  %v4998_v43 = vld [vmem:[%s4579_s24 + $0x1c] sm:$0xf] }
 0x228   : > { %3365 = vmatprep.mubr.msk.bf16.mxu0 %vm4211_vm0, %v4210_v0  ;;  %3401 = vmatprep.mubr.msk.bf16.mxu1 %vm4211_vm0, %v4210_v0 }
 0x229   : > { %v1106_v56 = vadd.f32 %v4882_v22, %v1090_v55  ;;  %3454 = vmatpush3.bf16.msra.mxu1 %v3867_v45  ;;  %3418 = vmatpush3.bf16.msra.mxu0 %v4763_v14  ;;  %v1114_v61 = vmax.f32 %v1105_v12, 0.0  ;;  %v1959_v45 = vadd.bf16 %v4995_v41, %v1611_v11  ;;  %v1960_v12 = vadd.bf16 %v4998_v43, %v1612_v1 }
 0x22a   : > { %v1028_v60 = vpop.f32.mrb[32].mxu0  ;;  %3455 = vmatprep.subr.bf16.mxu1 %v4210_v0  ;;  %3419 = vmatprep.subr.bf16.mxu0 %v4210_v0 }
 0x22b   : > { %v1115_v48 = vmax.f32 %v1106_v56, 0.0  ;;  %v1082_v44 = vsub.f32 %v1028_v60, %v4844_v5  ;;  %v3299_v49 = vpop.f32.mrb[33].mxu0  ;;  %v2966_v55 = vcombine.low %v1959_v45, %v1960_v12  ;;  %v5005_v56 = vld [vmem:[%s4579_s24 + $0x24] sm:$0xf] }
 0x22c   : > { %v1031_v50 = vpop.f32.mrb[34].mxu0  ;;  %v1961_v60 = vadd.bf16 %v5005_v56, %v1613_v4  ;;  %v5018_v49 = vld [vmem:[%s4579_s24 + $0x3c] sm:$0xf] }
 0x22d   : > { %v1091_v51 = vsub.f32 %v1082_v44, %v4846_v6  ;;  %v1083_v52 = vsub.f32 %v1031_v50, %v4851_v24  ;;  %v3300_v9 = vpop.f32.mrb[35].mxu0  ;;  %v1126_v53 = vpack.c.bf16 %v1115_v48, %v1114_v61  ;;  %3456 = vmatpush3.bf16.msra.mxu1 %v3868_v13  ;;  %3420 = vmatpush3.bf16.msra.mxu0 %v4767_v15  ;;  %v3870_v15 = vld [vmem:[#allocation7 + $0x68] sm:$0xff]   ;;  %v5008_v13 = vld [vmem:[%s4579_s24 + $0x2c] sm:$0xf] }
 0x22e   : > { %3457 = vmatprep.subr.bf16.mxu1 %v4210_v0  ;;  %3421 = vmatprep.subr.bf16.mxu0 %v4210_v0  ;;  %v1962_v61 = vadd.bf16 %v5008_v13, %v1614_v21  ;;  %v5015_v44 = vld [vmem:[%s4579_s24 + $0x34] sm:$0xf]  ;;  %v5025_v9 = vld [vmem:[%s4579_s24 + $0x44] sm:$0xf] }
 0x22f   : > { %v1107_v14 = vadd.f32 %v4882_v22, %v1091_v51  ;;  %v1092_v5 = vsub.f32 %v1083_v52, %v4854_v25  ;;  %3366 = vmatmul.mubr.bf16.gmra.mrb[48].mxu0 %v1126_v53  ;;  %3402 = vmatmul.mubr.bf16.gmra.mrb[48].mxu1 %v1126_v53  ;;  %v1963_v50 = vadd.bf16 %v5015_v44, %v1615_v23 }
 0x230   : > { %3369 = vmatprep.mubr.msk.bf16.mxu0 %vm4211_vm0, %v4210_v0  ;;  %3405 = vmatprep.mubr.msk.bf16.mxu1 %vm4211_vm0, %v4210_v0  ;;  %v2967_v48 = vcombine.low %v1961_v60, %v1962_v61  ;;  %v1964_v51 = vadd.bf16 %v5018_v49, %v1616_v34  ;;  %v1965_v53 = vadd.bf16 %v5025_v9, %v1617_v39  ;;  %v3887_v60 = vld [vmem:[#allocation8 + $0x48] sm:$0xff]  }
 0x231   : > { %v1108_v6 = vadd.f32 %v4882_v22, %v1092_v5  ;;  %3458 = vmatpush3.bf16.msra.mxu1 %v3869_v54  ;;  %3422 = vmatpush3.bf16.msra.mxu0 %v4771_v16  ;;  %v1116_v25 = vmax.f32 %v1107_v14, 0.0  ;;  %v2952_v14 = vcombine.low %v4984_v32, %v4987_v33  ;;  %v2953_v5 = vcombine.low %v4995_v41, %v4998_v43 }
 0x232   : > { %v1036_v24 = vpop.f32.mrb[36].mxu0  ;;  %3459 = vmatprep.subr.bf16.mxu1 %v4210_v0  ;;  %3423 = vmatprep.subr.bf16.mxu0 %v4210_v0  ;;  %v2968_v52 = vcombine.low %v1963_v50, %v1964_v51  ;;  %v2969_v54 = vcombine.low %v1965_v53, %v1965_v53  ;;  %v3888_v53 = vld [vmem:[#allocation8 + $0x50] sm:$0xff]  }
 0x233   : > { %v1117_v57 = vmax.f32 %v1108_v6, 0.0  ;;  %v1084_v58 = vsub.f32 %v1036_v24, %v4864_v37  ;;  %v3303_v59 = vpop.f32.mrb[37].mxu0  ;;  %v2954_v6 = vcombine.low %v5005_v56, %v5008_v13 }
 0x234   : > { %v1039_v10 = vpop.f32.mrb[38].mxu0 }
 0x235   : > { %v1093_v27 = vsub.f32 %v1084_v58, %v4866_v42  ;;  %v3304_v62 = vpop.f32.mrb[39].mxu0  ;;  %v1127_v20 = vpack.c.bf16 %v1117_v57, %v1116_v25  ;;  %3460 = vmatpush3.bf16.msra.mxu1 %v3870_v15  ;;  %3424 = vmatpush3.bf16.msra.mxu0 %v4774_v17  ;;  %v3871_v42 = vld [vmem:[#allocation7 + $0x70] sm:$0xff]   ;;  %v2955_v15 = vcombine.low %v5015_v44, %v5018_v49 }
 0x236   : > { %3461 = vmatprep.subr.bf16.mxu1 %v4210_v0  ;;  %3425 = vmatprep.subr.bf16.mxu0 %v4210_v0 }
 0x237   : > { %v1109_v16 = vadd.f32 %v4882_v22, %v1093_v27  ;;  %3370 = vmatmul.mubr.bf16.gmra.mrb[52].mxu0 %v1127_v20  ;;  %3406 = vmatmul.mubr.bf16.gmra.mrb[52].mxu1 %v1127_v20  ;;  %v1609_v22 = vld [vmem:[%s4572_s27 + $0x4] sm:$0xf] }
 0x238   : > { %3373 = vmatprep.mubr.msk.bf16.mxu0 %vm4211_vm0, %v4210_v0  ;;  %3409 = vmatprep.mubr.msk.bf16.mxu1 %vm4211_vm0, %v4210_v0  ;;  %v1957_v40 = vadd.bf16 %v4984_v32, %v1609_v22 }
 0x239   : > { %v1118_v37 = vmax.f32 %v1109_v16, 0.0  ;;  %3426 = vmatpush3.bf16.msra.mxu0 %v4779_v18  ;;  %3462 = vmatpush3.bf16.msra.mxu1 %v3871_v42  ;;  %v3872_v18 = vld [vmem:[#allocation7 + $0x78] sm:$0xff]  }
 0x23a   : > { %3427 = vmatprep.subr.bf16.mxu0 %v4210_v0  ;;  %3463 = vmatprep.subr.bf16.mxu1 %v4210_v0 }
 0x23b   : > { %v1128_v17 = vpack.c.bf16 %v1118_v37, %v1118_v37 }
 0x23d   : > { %3428 = vmatpush3.bf16.msra.mxu0 %v4783_v19  ;;  %3464 = vmatpush3.bf16.msra.mxu1 %v3872_v18  ;;  %v1610_v19 = vld [vmem:[%s4572_s27 + $0xc] sm:$0xf]  ;;  %s4212_s27 = smov [#allocation14]  }
 0x23e   : > { %3485 = vmatprep.subr.bf16.mxu0 %v4210_v0  ;;  %v2939_v63 = vcombine.low %v1609_v22, %v1610_v19  ;;  %3521 = vmatprep.subr.bf16.mxu1 %v4210_v0  ;;  %v1958_v35 = vadd.bf16 %v4987_v33, %v1610_v19  ;;  %s4119_s0 = sshll.u32 %s4212_s27, 4  ;;  %s4120_s0 = int_to_ptr.vmem [resolvable:$false] %s4119_s0 }
 0x23f   : > { %3374 = vmatmul.mubr.bf16.gmra.mrb[56].mxu0 %v1128_v17  ;;  %3410 = vmatmul.mubr.bf16.gmra.mrb[56].mxu1 %v1128_v17  ;;  %s4121_s4 = scalar_lea.vmem %s4120_s0, 9216  ;;  %p4122_p4 = scmp.lt.s32.totalorder %s5457_s9, %s4120_s0 }
 0x240   : > { %3465 = vmatprep.mubr.msk.bf16.mxu1 %vm4211_vm0, %v4210_v0  ;;  %3429 = vmatprep.mubr.msk.bf16.mxu0 %vm4211_vm0, %v4210_v0  ;;  %v2965_v36 = vcombine.low %v1957_v40, %v1958_v35  ;;  %p4123_p8 = scmp.lt.s32.totalorder %s4121_s4, %s4115_s29 }
 0x242   : > { %p4124_p9 = por %p4123_p8, %p4122_p4 }
 0x244   : > { %p4125_p7 = pnand %p4124_p9, %p4118_p10 }
 0x247   : > { %3466 = vmatmul.mubr.bf16.vlgmr.msra.gmra.mrb[60].mxu1 %v2939_v63 }
 0x248   : > { %3469 = vmatprep.mubr.msk.bf16.mxu1 %vm4211_vm0, %v4210_v0  ;;  %3522 = vmatpush3.bf16.msra.mxu1 %v3875_v30 }
 0x249   : > { %3523 = vmatprep.subr.bf16.mxu1 %v4210_v0 }
 0x24c   : > { %3524 = vmatpush3.bf16.msra.mxu1 %v3876_v3  ;;  %v5052_v3 = vld [vmem:[%s5549_s15] ss:$0 sm:$0xff] }
 0x24d   : > { %3525 = vmatprep.subr.bf16.mxu1 %v4210_v0 }
 0x24f   : > { %3470 = vmatmul.mubr.bf16.gmra.mrb[64].mxu1 %v2940_v2 }
 0x250   : > { %3473 = vmatprep.mubr.msk.bf16.mxu1 %vm4211_vm0, %v4210_v0  ;;  %3526 = vmatpush3.bf16.msra.mxu1 %v3878_v26 }
 0x251   : > { %3527 = vmatprep.subr.bf16.mxu1 %v4210_v0 }
 0x254   : > { %3528 = vmatpush3.bf16.msra.mxu1 %v3879_v8 }
 0x255   : > { %3529 = vmatprep.subr.bf16.mxu1 %v4210_v0 }
 0x257   : > { %3474 = vmatmul.mubr.bf16.gmra.mrb[68].mxu1 %v2941_v7 }
 0x258   : > { %3477 = vmatprep.mubr.msk.bf16.mxu1 %vm4211_vm0, %v4210_v0  ;;  %3530 = vmatpush3.bf16.msra.mxu1 %v3881_v29 }
 0x259   : > { %3531 = vmatprep.subr.bf16.mxu1 %v4210_v0 }
 0x25c   : > { %3532 = vmatpush3.bf16.msra.mxu1 %v3882_v38 }
 0x25d   : > { %3533 = vmatprep.subr.bf16.mxu1 %v4210_v0 }
 0x25f   : > { %3478 = vmatmul.mubr.bf16.gmra.mrb[72].mxu1 %v2942_v28 }
 0x260   : > { %3481 = vmatprep.mubr.msk.bf16.mxu1 %vm4211_vm0, %v4210_v0  ;;  %3534 = vmatpush3.bf16.msra.mxu1 %v3884_v47 }
 0x261   : > { %3535 = vmatprep.subr.bf16.mxu1 %v4210_v0 }
 0x264   : > { %3536 = vmatpush3.bf16.msra.mxu1 %v3885_v31 }
 0x265   : > { %3593 = vmatprep.subr.bf16.mxu1 %v4210_v0 }
 0x267   : > { %3482 = vmatmul.mubr.bf16.gmra.mrb[76].mxu1 %v2943_v46  ;;  %v3886_v46 = vld [vmem:[#allocation8 + $0x40] sm:$0xff]  }
 0x268   : > { %3537 = vmatprep.mubr.msk.bf16.mxu1 %vm4211_vm0, %v4210_v0 }
 0x26f   : > { %3538 = vmatmul.mubr.bf16.vlgmr.msra.gmra.mrb[80].mxu1 %v2965_v36 }
 0x270   : > { %3541 = vmatprep.mubr.msk.bf16.mxu1 %vm4211_vm0, %v4210_v0 }
 0x277   : > { %3542 = vmatmul.mubr.bf16.gmra.mrb[84].mxu1 %v2966_v55 }
 0x278   : > { %3545 = vmatprep.mubr.msk.bf16.mxu1 %vm4211_vm0, %v4210_v0 }
 0x27f   : > { %3546 = vmatmul.mubr.bf16.gmra.mrb[88].mxu1 %v2967_v48 }
 0x280   : > { %3549 = vmatprep.mubr.msk.bf16.mxu1 %vm4211_vm0, %v4210_v0 }
 0x287   : > { %3550 = vmatmul.mubr.bf16.gmra.mrb[92].mxu1 %v2968_v52 }
 0x288   : > { %3553 = vmatprep.mubr.msk.bf16.mxu1 %vm4211_vm0, %v4210_v0 }
 0x28f   : > { %3554 = vmatmul.mubr.bf16.gmra.mrb[96].mxu1 %v2969_v54 }
 0x290   : > { %3609 = vmatprep.mubr.msk.bf16.mxu1 %vm4211_vm0, %v4210_v0 }
 0x2c8   : > { %v1227_v24 = vpop.f32.mrb[20].mxu1 }
 0x2c9   : > { %v3323_v25 = vpop.f32.mrb[21].mxu1 }
 0x2ca   : > { %v1230_v57 = vpop.f32.mrb[22].mxu1 }
 0x2cb   : > { %v3324_v58 = vpop.f32.mrb[23].mxu1 }
 0x2d1   : > { %v1235_v59 = vpop.f32.mrb[24].mxu1 }
 0x2d2   : > { %v3327_v10 = vpop.f32.mrb[25].mxu1 }
 0x2d3   : > { %v1238_v27 = vpop.f32.mrb[26].mxu1 }
 0x2d4   : > { %v3328_v62 = vpop.f32.mrb[27].mxu1 }
 0x2d5   : > { %v3889_v62 = vld [vmem:[#allocation8 + $0x58] sm:$0xff]  }
 0x2d9   : > { %v5038_v20 = vpop.f32.mrb[28].mxu1 }
 0x2da   : > { %v3331_v16 = vpop.f32.mrb[29].mxu1 }
 0x2db   : > { %v5040_v37 = vpop.f32.mrb[30].mxu1 }
 0x2dc   : > { %v3332_v17 = vpop.f32.mrb[31].mxu1 }
 0x2e1   : > { %v5042_v42 = vpop.f32.mrb[32].mxu1 }
 0x2e2   : > { %v3335_v18 = vpop.f32.mrb[33].mxu1 }
 0x2e3   : > { %v5044_v22 = vpop.f32.mrb[34].mxu1 }
 0x2e4   : > { %v3336_v19 = vpop.f32.mrb[35].mxu1 }
 0x2e9   : > { %v5046_v63 = vpop.f32.mrb[36].mxu1 }
 0x2ea   : > { %v3339_v11 = vpop.f32.mrb[37].mxu1 }
 0x2eb   : > { %v1262_v1 = vpop.f32.mrb[38].mxu1  ;;  %v3890_v11 = vld [vmem:[#allocation8 + $0x60] sm:$0xff]  }
 0x2ec   : > { %v3340_v2 = vpop.f32.mrb[39].mxu1 }
 0x2f2   : > { %v1363_v30 = vpop.f32.mrb[40].mxu0  ;;  %v5054_v4 = vpop.f32.mrb[40].mxu1 }
 0x2f3   : > { %v1401_v21 = vsub.f32 %v1227_v24, %v1363_v30  ;;  %v3359_v7 = vpop.f32.mrb[41].mxu0  ;;  %v3395_v26 = vpop.f32.mrb[41].mxu1 }
 0x2f4   : > { %v1366_v8 = vpop.f32.mrb[42].mxu0  ;;  %v5056_v23 = vpop.f32.mrb[42].mxu1 }
 0x2f5   : > { %v1417_v34 = vadd.f32 %v5052_v3, %v1401_v21  ;;  %v1402_v28 = vsub.f32 %v1230_v57, %v1366_v8  ;;  %v3360_v29 = vpop.f32.mrb[43].mxu0  ;;  %v3396_v38 = vpop.f32.mrb[43].mxu1 }
 0x2f7   : > { %1591 = vst [vmem:[%s5059_s28] sm:$0xff] %v1417_v34  ;;  %v1418_v39 = vadd.f32 %v5052_v3, %v1402_v28 }
 0x2f9   : > { %v1426_v47 = vpack.c.bf16 %v1418_v39, %v1417_v34  ;;  %1592 = vst [vmem:[%s5059_s28 + $0x20] sm:$0xff] %v1418_v39  ;;  %v3891_v34 = vld [vmem:[#allocation8 + $0x68] sm:$0xff]  }
 0x2fa   : > { %v1371_v31 = vpop.f32.mrb[44].mxu0  ;;  %v5064_v40 = vpop.f32.mrb[44].mxu1 }
 0x2fb   : > { %v1403_v35 = vsub.f32 %v1235_v59, %v1371_v31  ;;  %v3363_v36 = vpop.f32.mrb[45].mxu0  ;;  %v3399_v45 = vpop.f32.mrb[45].mxu1  ;;  %3430 = vmatmul.mubr.bf16.vlgmr.msra.gmra.mrb[60].mxu0 %v1426_v47 }
 0x2fc   : > { %v1374_v12 = vpop.f32.mrb[46].mxu0  ;;  %v5066_v55 = vpop.f32.mrb[46].mxu1  ;;  %3486 = vmatpush3.bf16.msra.mxu0 %v3886_v46  ;;  %3433 = vmatprep.mubr.msk.bf16.mxu0 %vm4211_vm0, %v4210_v0  ;;  %v3892_v46 = vld [vmem:[#allocation8 + $0x70] sm:$0xff]  }
 0x2fd   : > { %v1419_v61 = vadd.f32 %v5052_v3, %v1403_v35  ;;  %v1404_v48 = vsub.f32 %v1238_v27, %v1374_v12  ;;  %v3364_v50 = vpop.f32.mrb[47].mxu0  ;;  %v3400_v51 = vpop.f32.mrb[47].mxu1  ;;  %3487 = vmatprep.subr.bf16.mxu0 %v4210_v0 }
 0x2ff   : > { %1593 = vst [vmem:[%s5059_s28 + $0x40] sm:$0xff] %v1419_v61  ;;  %v1420_v52 = vadd.f32 %v5052_v3, %v1404_v48 }
 0x300   : > { %3488 = vmatpush3.bf16.msra.mxu0 %v3887_v60 }
 0x301   : > { %1594 = vst [vmem:[%s5059_s28 + $0x60] sm:$0xff] %v1420_v52  ;;  %v1427_v54 = vpack.c.bf16 %v1420_v52, %v1419_v61  ;;  %3489 = vmatprep.subr.bf16.mxu0 %v4210_v0  ;;  %v3893_v61 = vld [vmem:[#allocation8 + $0x78] sm:$0xff]  }
 0x302   : > { %v1379_v24 = vpop.f32.mrb[48].mxu0  ;;  %v5076_v25 = vpop.f32.mrb[48].mxu1 }
 0x303   : > { %v1405_v57 = vsub.f32 %v5038_v20, %v1379_v24  ;;  %v3367_v58 = vpop.f32.mrb[49].mxu0  ;;  %v3403_v59 = vpop.f32.mrb[49].mxu1  ;;  %3434 = vmatmul.mubr.bf16.gmra.mrb[64].mxu0 %v1427_v54 }
 0x304   : > { %v1382_v10 = vpop.f32.mrb[50].mxu0  ;;  %v5079_v27 = vpop.f32.mrb[50].mxu1  ;;  %3490 = vmatpush3.bf16.msra.mxu0 %v3888_v53  ;;  %3437 = vmatprep.mubr.msk.bf16.mxu0 %vm4211_vm0, %v4210_v0  ;;  %v2956_v59 = vcombine.low %v5025_v9, %v5025_v9 }
 0x305   : > { %v1421_v16 = vadd.f32 %v5052_v3, %v1405_v57  ;;  %v1406_v17 = vsub.f32 %v5040_v37, %v1382_v10  ;;  %v3368_v18 = vpop.f32.mrb[51].mxu0  ;;  %v3404_v19 = vpop.f32.mrb[51].mxu1  ;;  %3491 = vmatprep.subr.bf16.mxu0 %v4210_v0 }
 0x307   : > { %1595 = vst [vmem:[%s5059_s28 + $0x80] sm:$0xff] %v1421_v16  ;;  %v1422_v20 = vadd.f32 %v5052_v3, %v1406_v17 }
 0x308   : > { %3492 = vmatpush3.bf16.msra.mxu0 %v3889_v62 }
 0x309   : > { %1596 = vst [vmem:[%s5059_s28 + $0xa0] sm:$0xff] %v1422_v20  ;;  %v1428_v1 = vpack.c.bf16 %v1422_v20, %v1421_v16  ;;  %3493 = vmatprep.subr.bf16.mxu0 %v4210_v0 }
 0x30a   : > { %v1387_v2 = vpop.f32.mrb[52].mxu0  ;;  %v5090_v30 = vpop.f32.mrb[52].mxu1 }
 0x30b   : > { %v1407_v21 = vsub.f32 %v5042_v42, %v1387_v2  ;;  %v3371_v37 = vpop.f32.mrb[53].mxu0  ;;  %v3407_v7 = vpop.f32.mrb[53].mxu1  ;;  %3438 = vmatmul.mubr.bf16.gmra.mrb[68].mxu0 %v1428_v1 }
 0x30c   : > { %v1390_v26 = vpop.f32.mrb[54].mxu0  ;;  %v5093_v8 = vpop.f32.mrb[54].mxu1  ;;  %3494 = vmatpush3.bf16.msra.mxu0 %v3890_v11  ;;  %3441 = vmatprep.mubr.msk.bf16.mxu0 %vm4211_vm0, %v4210_v0 }
 0x30d   : > { %v1423_v28 = vadd.f32 %v5052_v3, %v1407_v21  ;;  %v1408_v29 = vsub.f32 %v5044_v22, %v1390_v26  ;;  %v3372_v38 = vpop.f32.mrb[55].mxu0  ;;  %v3408_v39 = vpop.f32.mrb[55].mxu1  ;;  %3495 = vmatprep.subr.bf16.mxu0 %v4210_v0  ;;  %v5175_v26 = vld [vmem:[#allocation11 + $0x40] sm:$0xff]  }
 0x30f   : > { %1597 = vst [vmem:[%s5059_s28 + $0xc0] sm:$0xff] %v1423_v28  ;;  %v1424_v42 = vadd.f32 %v5052_v3, %v1408_v29 }
 0x310   : > { %3496 = vmatpush3.bf16.msra.mxu0 %v3891_v34  ;;  %v5177_v34 = vld [vmem:[#allocation13 + $0x40] sm:$0xff]  }
 0x311   : > { %1598 = vst [vmem:[%s5059_s28 + $0xe0] sm:$0xff] %v1424_v42  ;;  %v1429_v47 = vpack.c.bf16 %v1424_v42, %v1423_v28  ;;  %3497 = vmatprep.subr.bf16.mxu0 %v4210_v0  ;;  %3594 = vmatpush3.bf16.msra.mxu1 %v5177_v34 }
 0x312   : > { %v1395_v31 = vpop.f32.mrb[56].mxu0  ;;  %v5104_v35 = vpop.f32.mrb[56].mxu1  ;;  %3595 = vmatprep.subr.bf16.mxu1 %v4210_v0 }
 0x313   : > { %v1409_v36 = vsub.f32 %v5046_v63, %v1395_v31  ;;  %v3375_v22 = vpop.f32.mrb[57].mxu0  ;;  %v3411_v45 = vpop.f32.mrb[57].mxu1  ;;  %3442 = vmatmul.mubr.bf16.gmra.mrb[72].mxu0 %v1429_v47  ;;  %v5191_v47 = vld [vmem:[#allocation13 + $0x48] sm:$0xff]  }
 0x314   : > { %v1398_v12 = vpop.f32.mrb[58].mxu0  ;;  %v1500_v60 = vpop.f32.mrb[58].mxu1  ;;  %3445 = vmatprep.mubr.msk.bf16.mxu0 %vm4211_vm0, %v4210_v0  ;;  %3498 = vmatpush3.bf16.msra.mxu0 %v3892_v46  ;;  %v5189_v46 = vld [vmem:[#allocation11 + $0x48] sm:$0xff]   ;;  %v5199_v45 = vld [vmem:[#allocation11 + $0x50] sm:$0xff]  }
 0x315   : > { %v1425_v48 = vadd.f32 %v5052_v3, %v1409_v36  ;;  %v3376_v50 = vpop.f32.mrb[59].mxu0  ;;  %v3412_v51 = vpop.f32.mrb[59].mxu1  ;;  %3499 = vmatprep.subr.bf16.mxu0 %v4210_v0  ;;  %3596 = vmatpush3.bf16.msra.mxu1 %v5191_v47  ;;  %v5201_v12 = vld [vmem:[#allocation13 + $0x50] sm:$0xff]  }
 0x316   : > { %3597 = vmatprep.subr.bf16.mxu1 %v4210_v0  ;;  %v5213_v50 = vld [vmem:[#allocation11 + $0x58] sm:$0xff]  }
 0x317   : > { %1599 = vst [vmem:[%s5059_s28 + $0x100] sm:$0xff] %v1425_v48  ;;  %v1430_v52 = vpack.c.bf16 %v1425_v48, %v1425_v48  ;;  %v5215_v51 = vld [vmem:[#allocation13 + $0x58] sm:$0xff]  }
 0x318   : > { %3500 = vmatpush3.bf16.msra.mxu0 %v3893_v61 }
 0x319   : > { %3557 = vmatprep.subr.bf16.mxu0 %v4210_v0  ;;  %3598 = vmatpush3.bf16.msra.mxu1 %v5201_v12 }
 0x31a   : > { %v5118_v63 = vpop.f32.mrb[60].mxu1  ;;  %3599 = vmatprep.subr.bf16.mxu1 %v4210_v0 }
 0x31b   : > { %3446 = vmatmul.mubr.bf16.gmra.mrb[76].mxu0 %v1430_v52  ;;  %v3467_v3 = vpop.f32.mrb[61].mxu1 }
 0x31c   : > { %3501 = vmatprep.mubr.msk.bf16.mxu0 %vm4211_vm0, %v4210_v0  ;;  %v5122_v53 = vpop.f32.mrb[62].mxu1 }
 0x31d   : > { %v3468_v54 = vpop.f32.mrb[63].mxu1  ;;  %3600 = vmatpush3.bf16.msra.mxu1 %v5215_v51 }
 0x31e   : > { %3601 = vmatprep.subr.bf16.mxu1 %v4210_v0 }
 0x322   : > { %v5127_v24 = vpop.f32.mrb[64].mxu1 }
 0x323   : > { %3502 = vmatmul.mubr.bf16.vlgmr.msra.gmra.mrb[80].mxu0 %v2952_v14  ;;  %v3471_v32 = vpop.f32.mrb[65].mxu1 }
 0x324   : > { %3505 = vmatprep.mubr.msk.bf16.mxu0 %vm4211_vm0, %v4210_v0  ;;  %v5131_v33 = vpop.f32.mrb[66].mxu1  ;;  %3558 = vmatpush3.bf16.msra.mxu0 %v5175_v26 }
 0x325   : > { %v3472_v14 = vpop.f32.mrb[67].mxu1  ;;  %3559 = vmatprep.subr.bf16.mxu0 %v4210_v0 }
 0x328   : > { %3560 = vmatpush3.bf16.msra.mxu0 %v5189_v46 }
 0x329   : > { %3561 = vmatprep.subr.bf16.mxu0 %v4210_v0 }
 0x32a   : > { %v5136_v57 = vpop.f32.mrb[68].mxu1 }
 0x32b   : > { %3506 = vmatmul.mubr.bf16.gmra.mrb[84].mxu0 %v2953_v5  ;;  %v3475_v41 = vpop.f32.mrb[69].mxu1 }
 0x32c   : > { %3509 = vmatprep.mubr.msk.bf16.mxu0 %vm4211_vm0, %v4210_v0  ;;  %v5140_v43 = vpop.f32.mrb[70].mxu1  ;;  %3562 = vmatpush3.bf16.msra.mxu0 %v5199_v45  ;;  %v5225_v41 = vld [vmem:[#allocation11 + $0x60] sm:$0xff]  }
 0x32d   : > { %v3476_v5 = vpop.f32.mrb[71].mxu1  ;;  %3563 = vmatprep.subr.bf16.mxu0 %v4210_v0 }
 0x32e   : > { %v5227_v5 = vld [vmem:[#allocation13 + $0x60] sm:$0xff]  }
 0x32f   : > { %3602 = vmatpush3.bf16.msra.mxu1 %v5227_v5 }
 0x330   : > { %3564 = vmatpush3.bf16.msra.mxu0 %v5213_v50  ;;  %3603 = vmatprep.subr.bf16.mxu1 %v4210_v0 }
 0x331   : > { %3565 = vmatprep.subr.bf16.mxu0 %v4210_v0 }
 0x332   : > { %v5145_v58 = vpop.f32.mrb[72].mxu1 }
 0x333   : > { %3510 = vmatmul.mubr.bf16.gmra.mrb[88].mxu0 %v2954_v6  ;;  %v3479_v56 = vpop.f32.mrb[73].mxu1 }
 0x334   : > { %3513 = vmatprep.mubr.msk.bf16.mxu0 %vm4211_vm0, %v4210_v0  ;;  %v5149_v13 = vpop.f32.mrb[74].mxu1  ;;  %3566 = vmatpush3.bf16.msra.mxu0 %v5225_v41  ;;  %v5231_v56 = vld [vmem:[#allocation11 + $0x68] sm:$0xff]  }
 0x335   : > { %v3480_v6 = vpop.f32.mrb[75].mxu1  ;;  %3567 = vmatprep.subr.bf16.mxu0 %v4210_v0 }
 0x336   : > { %v5233_v6 = vld [vmem:[#allocation13 + $0x68] sm:$0xff]  }
 0x337   : > { %3604 = vmatpush3.bf16.msra.mxu1 %v5233_v6 }
 0x338   : > { %3568 = vmatpush3.bf16.msra.mxu0 %v5231_v56  ;;  %3605 = vmatprep.subr.bf16.mxu1 %v4210_v0 }
 0x339   : > { %3569 = vmatprep.subr.bf16.mxu0 %v4210_v0 }
 0x33a   : > { %v5153_v10 = vpop.f32.mrb[76].mxu1 }
 0x33b   : > { %3514 = vmatmul.mubr.bf16.gmra.mrb[92].mxu0 %v2955_v15  ;;  %v3483_v62 = vpop.f32.mrb[77].mxu1 }
 0x33c   : > { %3517 = vmatprep.mubr.msk.bf16.mxu0 %vm4211_vm0, %v4210_v0  ;;  %v1789_v44 = vpop.f32.mrb[78].mxu1  ;;  %v5243_v62 = vld [vmem:[#allocation13 + $0x70] sm:$0xff]  }
 0x33d   : > { %v3484_v49 = vpop.f32.mrb[79].mxu1  ;;  %3606 = vmatpush3.bf16.msra.mxu1 %v5243_v62  ;;  %v5249_v44 = vld [vmem:[#allocation11 + $0x78] sm:$0xff]  }
 0x33e   : > { %3607 = vmatprep.subr.bf16.mxu1 %v4210_v0  ;;  %v5251_v49 = vld [vmem:[#allocation13 + $0x78] sm:$0xff]  }
 0x341   : > { %3608 = vmatpush3.bf16.msra.mxu1 %v5251_v49 }
 0x342   : > { %v5157_v15 = vpop.f32.mrb[80].mxu1  ;;  %3665 = vmatprep.subr.bf16.mxu1 %v4210_v0 }
 0x343   : > { %3518 = vmatmul.mubr.bf16.gmra.mrb[96].mxu0 %v2956_v59  ;;  %v2166_v16 = vsub.f32 %v5157_v15, %v5118_v63  ;;  %v3539_v17 = vpop.f32.mrb[81].mxu1  ;;  %v5241_v59 = vld [vmem:[#allocation11 + $0x70] sm:$0xff]  }
 0x344   : > { %3573 = vmatprep.mubr.msk.bf16.mxu0 %vm4211_vm0, %v4210_v0  ;;  %v5161_v18 = vpop.f32.mrb[82].mxu1  ;;  %3570 = vmatpush3.bf16.msra.mxu0 %v5241_v59 }
 0x345   : > { %v2167_v9 = vsub.f32 %v5161_v18, %v5122_v53  ;;  %v3540_v19 = vpop.f32.mrb[83].mxu1  ;;  %3571 = vmatprep.subr.bf16.mxu0 %v4210_v0 }
 0x346   : > { %v2938_v19 = vld [vmem:[%s5550_s22] ss:$0 sm:$0xff] }
 0x348   : > { %3572 = vmatpush3.bf16.msra.mxu0 %v5249_v44 }
 0x349   : > { %3629 = vmatprep.subr.bf16.mxu0 %v4210_v0 }
 0x34a   : > { %v5165_v20 = vpop.f32.mrb[84].mxu1 }
 0x34b   : > { %v2168_v11 = vsub.f32 %v5165_v20, %v5127_v24  ;;  %v3543_v1 = vpop.f32.mrb[85].mxu1 }
 0x34c   : > { %v5169_v2 = vpop.f32.mrb[86].mxu1 }
 0x34d   : > { %v2169_v21 = vsub.f32 %v5169_v2, %v5131_v33  ;;  %v3544_v37 = vpop.f32.mrb[87].mxu1 }
 0x352   : > { %v5173_v7 = vpop.f32.mrb[88].mxu1 }
 0x353   : > { %v2170_v28 = vsub.f32 %v5173_v7, %v5136_v57  ;;  %v3547_v29 = vpop.f32.mrb[89].mxu1 }
 0x354   : > { %v5181_v38 = vpop.f32.mrb[90].mxu1 }
 0x355   : > { %v2171_v39 = vsub.f32 %v5181_v38, %v5140_v43  ;;  %v3548_v42 = vpop.f32.mrb[91].mxu1 }
 0x35a   : > { %v5193_v31 = vpop.f32.mrb[92].mxu1 }
 0x35b   : > { %v3551_v22 = vpop.f32.mrb[93].mxu1 }
 0x35c   : > { %v5205_v60 = vpop.f32.mrb[94].mxu1 }
 0x35d   : > { %v3552_v48 = vpop.f32.mrb[95].mxu1 }
 0x362   : > { %v5217_v52 = vpop.f32.mrb[96].mxu1 }
 0x363   : > { %v3555_v54 = vpop.f32.mrb[97].mxu1 }
 0x364   : > { %v2128_v32 = vpop.f32.mrb[98].mxu1 }
 0x365   : > { %v3556_v14 = vpop.f32.mrb[99].mxu1 }
 0x3ce   : > { %v1537_v17 = vpop.f32.mrb[60].mxu0 }
 0x3cf   : > { %v1538_v1 = vadd.f32 %v1537_v17, %v5054_v4  ;;  %v3431_v37 = vpop.f32.mrb[61].mxu0 }
 0x3d0   : > { %v1540_v29 = vpop.f32.mrb[62].mxu0 }
 0x3d1   : > { %v1582_v42 = vadd.f32 %v2938_v19, %v1538_v1  ;;  %v1541_v22 = vadd.f32 %v1540_v29, %v5056_v23  ;;  %v3432_v48 = vpop.f32.mrb[63].mxu0 }
 0x3d3   : > { %1600 = vst [vmem:[%s5059_s28 + $0x10] sm:$0xff] %v1582_v42  ;;  %v1583_v54 = vadd.f32 %v2938_v19, %v1541_v22 }
 0x3d5   : > { %1601 = vst [vmem:[%s5059_s28 + $0x30] sm:$0xff] %v1583_v54 }
 0x3d6   : > { %v1545_v32 = vpop.f32.mrb[64].mxu0 }
 0x3d7   : > { %v1546_v14 = vadd.f32 %v1545_v32, %v5064_v40  ;;  %v3435_v3 = vpop.f32.mrb[65].mxu0 }
 0x3d8   : > { %v1548_v61 = vpop.f32.mrb[66].mxu0 }
 0x3d9   : > { %v1584_v36 = vadd.f32 %v2938_v19, %v1546_v14  ;;  %v1549_v4 = vadd.f32 %v1548_v61, %v5066_v55  ;;  %v3436_v17 = vpop.f32.mrb[67].mxu0 }
 0x3db   : > { %1602 = vst [vmem:[%s5059_s28 + $0x50] sm:$0xff] %v1584_v36  ;;  %v1585_v37 = vadd.f32 %v2938_v19, %v1549_v4 }
 0x3dd   : > { %1603 = vst [vmem:[%s5059_s28 + $0x70] sm:$0xff] %v1585_v37 }
 0x3de   : > { %v1553_v1 = vpop.f32.mrb[68].mxu0 }
 0x3df   : > { %v1554_v23 = vadd.f32 %v1553_v1, %v5076_v25  ;;  %v3439_v29 = vpop.f32.mrb[69].mxu0 }
 0x3e0   : > { %v1556_v42 = vpop.f32.mrb[70].mxu0 }
 0x3e1   : > { %v1586_v22 = vadd.f32 %v2938_v19, %v1554_v23  ;;  %v1557_v40 = vadd.f32 %v1556_v42, %v5079_v27  ;;  %v3440_v3 = vpop.f32.mrb[71].mxu0 }
 0x3e3   : > { %1604 = vst [vmem:[%s5059_s28 + $0x90] sm:$0xff] %v1586_v22  ;;  %v1587_v48 = vadd.f32 %v2938_v19, %v1557_v40 }
 0x3e5   : > { %1605 = vst [vmem:[%s5059_s28 + $0xb0] sm:$0xff] %v1587_v48 }
 0x3e6   : > { %v1561_v54 = vpop.f32.mrb[72].mxu0 }
 0x3e7   : > { %v1562_v55 = vadd.f32 %v1561_v54, %v5090_v30  ;;  %v3443_v36 = vpop.f32.mrb[73].mxu0  ;;  %v5281_v30 = vld [vmem:[%s5508_s7 + $0x1] ss:$0 sm:$0xff] }
 0x3e8   : > { %v1564_v61 = vpop.f32.mrb[74].mxu0 }
 0x3e9   : > { %v1588_v32 = vadd.f32 %v2938_v19, %v1562_v55  ;;  %v1565_v25 = vadd.f32 %v1564_v61, %v5093_v8  ;;  %v3444_v14 = vpop.f32.mrb[75].mxu0  ;;  %v5286_v8 = vld [vmem:[%s5509_s8 + $0x1] ss:$0 sm:$0xff] }
 0x3eb   : > { %1606 = vst [vmem:[%s5059_s28 + $0xd0] sm:$0xff] %v1588_v32  ;;  %v1589_v4 = vadd.f32 %v2938_v19, %v1565_v25 }
 0x3ed   : > { %1607 = vst [vmem:[%s5059_s28 + $0xf0] sm:$0xff] %v1589_v4 }
 0x3ee   : > { %v1569_v17 = vpop.f32.mrb[76].mxu0 }
 0x3ef   : > { %v1570_v27 = vadd.f32 %v1569_v17, %v5104_v35  ;;  %v3447_v37 = vpop.f32.mrb[77].mxu0 }
 0x3f0   : > { %v1572_v1 = vpop.f32.mrb[78].mxu0 }
 0x3f1   : > { %v1590_v23 = vadd.f32 %v2938_v19, %v1570_v27  ;;  %v3448_v29 = vpop.f32.mrb[79].mxu0 }
 0x3f3   : > { %1608 = vst [vmem:[%s5059_s28 + $0x110] sm:$0xff] %v1590_v23 }
 0x3f6   : > { %v1919_v42 = vpop.f32.mrb[80].mxu0 }
 0x3f7   : > { %v2131_v22 = vsub.f32 %v5118_v63, %v1919_v42  ;;  %v2175_v35 = vsub.f32 %v2166_v16, %v1919_v42  ;;  %v3503_v19 = vpop.f32.mrb[81].mxu0 }
 0x3f8   : > { %v1922_v40 = vpop.f32.mrb[82].mxu0 }
 0x3f9   : > { %v2148_v3 = vadd.f32 %v5281_v30, %v2131_v22  ;;  %v2192_v48 = vadd.f32 %v5286_v8, %v2175_v35  ;;  %v2132_v54 = vsub.f32 %v5122_v53, %v1922_v40  ;;  %v2176_v55 = vsub.f32 %v2167_v9, %v1922_v40  ;;  %v3504_v36 = vpop.f32.mrb[83].mxu0 }
 0x3fb   : > { %v2149_v61 = vadd.f32 %v5281_v30, %v2132_v54  ;;  %v2193_v32 = vadd.f32 %v5286_v8, %v2176_v55  ;;  %v2157_v25 = vmax.f32 %v2148_v3, 0.0  ;;  %v2201_v63 = vmax.f32 %v2192_v48, 0.0 }
 0x3fd   : > { %v2158_v15 = vmax.f32 %v2149_v61, 0.0  ;;  %v2202_v16 = vmax.f32 %v2193_v32, 0.0  ;;  %v5551_v32 = vsub.f32 %v5193_v31, %v5145_v58 }
 0x3fe   : > { %v1927_v14 = vpop.f32.mrb[84].mxu0 }
 0x3ff   : > { %v2210_v4 = vpack.c.bf16 %v2158_v15, %v2157_v25  ;;  %v5300_v17 = vpack.c.bf16 %v2202_v16, %v2201_v63  ;;  %v2133_v27 = vsub.f32 %v5127_v24, %v1927_v14  ;;  %v2177_v53 = vsub.f32 %v2168_v11, %v1927_v14  ;;  %v3507_v18 = vpop.f32.mrb[85].mxu0 }
 0x400   : > { %v1930_v9 = vpop.f32.mrb[86].mxu0 }
 0x401   : > { %v2150_v37 = vadd.f32 %v5281_v30, %v2133_v27  ;;  %v2194_v1 = vadd.f32 %v5286_v8, %v2177_v53  ;;  %v2134_v23 = vsub.f32 %v5131_v33, %v1930_v9  ;;  %v2178_v29 = vsub.f32 %v2169_v21, %v1930_v9  ;;  %v3508_v42 = vpop.f32.mrb[87].mxu0  ;;  %3574 = vmatmul.mubr.bf16.vlgmr.msra.gmra.mrb[100].mxu0 %v2210_v4 }
 0x402   : > { %3610 = vmatmul.mubr.bf16.vlgmr.msra.gmra.mrb[100].mxu1 %v5300_v17  ;;  %3577 = vmatprep.mubr.msk.bf16.mxu0 %vm4211_vm0, %v4210_v0  ;;  %v5552_v27 = vsub.f32 %v5205_v60, %v5149_v13 }
 0x403   : > { %v2151_v24 = vadd.f32 %v5281_v30, %v2134_v23  ;;  %v2195_v20 = vadd.f32 %v5286_v8, %v2178_v29  ;;  %3613 = vmatprep.mubr.msk.bf16.mxu1 %vm4211_vm0, %v4210_v0  ;;  %3630 = vmatpush3.bf16.msra.mxu0 %v5175_v26  ;;  %v2159_v33 = vmax.f32 %v2150_v37, 0.0  ;;  %v2203_v11 = vmax.f32 %v2194_v1, 0.0 }
 0x404   : > { %3631 = vmatprep.subr.bf16.mxu0 %v4210_v0  ;;  %3666 = vmatpush3.bf16.msra.mxu1 %v5177_v34  ;;  %v5553_v23 = vsub.f32 %v5217_v52, %v5153_v10 }
 0x405   : > { %v2160_v2 = vmax.f32 %v2151_v24, 0.0  ;;  %v2204_v21 = vmax.f32 %v2195_v20, 0.0  ;;  %3667 = vmatprep.subr.bf16.mxu1 %v4210_v0 }
 0x406   : > { %v1935_v22 = vpop.f32.mrb[88].mxu0 }
 0x407   : > { %v2135_v35 = vsub.f32 %v5136_v57, %v1935_v22  ;;  %v2179_v19 = vsub.f32 %v2170_v28, %v1935_v22  ;;  %v3511_v40 = vpop.f32.mrb[89].mxu0  ;;  %v2211_v3 = vpack.c.bf16 %v2160_v2, %v2159_v33  ;;  %v5327_v26 = vpack.c.bf16 %v2204_v21, %v2203_v11  ;;  %3632 = vmatpush3.bf16.msra.mxu0 %v5189_v46 }
 0x408   : > { %v1938_v34 = vpop.f32.mrb[90].mxu0  ;;  %3633 = vmatprep.subr.bf16.mxu0 %v4210_v0  ;;  %3668 = vmatpush3.bf16.msra.mxu1 %v5191_v47 }
 0x409   : > { %v2152_v48 = vadd.f32 %v5281_v30, %v2135_v35  ;;  %v2196_v54 = vadd.f32 %v5286_v8, %v2179_v19  ;;  %v2136_v55 = vsub.f32 %v5140_v43, %v1938_v34  ;;  %v2180_v57 = vsub.f32 %v2171_v39, %v1938_v34  ;;  %v3512_v7 = vpop.f32.mrb[91].mxu0  ;;  %3578 = vmatmul.mubr.bf16.gmra.mrb[104].mxu0 %v2211_v3 }
 0x40a   : > { %3614 = vmatmul.mubr.bf16.gmra.mrb[104].mxu1 %v5327_v26  ;;  %3581 = vmatprep.mubr.msk.bf16.mxu0 %vm4211_vm0, %v4210_v0 }
 0x40b   : > { %v2153_v28 = vadd.f32 %v5281_v30, %v2136_v55  ;;  %v2197_v46 = vadd.f32 %v5286_v8, %v2180_v57  ;;  %3617 = vmatprep.mubr.msk.bf16.mxu1 %vm4211_vm0, %v4210_v0  ;;  %3634 = vmatpush3.bf16.msra.mxu0 %v5199_v45  ;;  %v2161_v43 = vmax.f32 %v2152_v48, 0.0  ;;  %v2205_v38 = vmax.f32 %v2196_v54, 0.0 }
 0x40c   : > { %3635 = vmatprep.subr.bf16.mxu0 %v4210_v0  ;;  %3669 = vmatprep.subr.bf16.mxu1 %v4210_v0 }
 0x40d   : > { %v2162_v39 = vmax.f32 %v2153_v28, 0.0  ;;  %v2206_v47 = vmax.f32 %v2197_v46, 0.0  ;;  %3670 = vmatpush3.bf16.msra.mxu1 %v5201_v12 }
 0x40e   : > { %v1943_v36 = vpop.f32.mrb[92].mxu0  ;;  %3671 = vmatprep.subr.bf16.mxu1 %v4210_v0 }
 0x40f   : > { %v2137_v61 = vsub.f32 %v5145_v58, %v1943_v36  ;;  %v2181_v25 = vsub.f32 %v5551_v32, %v1943_v36  ;;  %v3515_v45 = vpop.f32.mrb[93].mxu0  ;;  %v2212_v63 = vpack.c.bf16 %v2162_v39, %v2161_v43  ;;  %v2217_v15 = vpack.c.bf16 %v2206_v47, %v2205_v38  ;;  %3636 = vmatpush3.bf16.msra.mxu0 %v5213_v50 }
 0x410   : > { %v1946_v16 = vpop.f32.mrb[94].mxu0  ;;  %3637 = vmatprep.subr.bf16.mxu0 %v4210_v0 }
 0x411   : > { %v2154_v14 = vadd.f32 %v5281_v30, %v2137_v61  ;;  %v2198_v12 = vadd.f32 %v5286_v8, %v2181_v25  ;;  %v2138_v4 = vsub.f32 %v5149_v13, %v1946_v16  ;;  %v2182_v53 = vsub.f32 %v5552_v27, %v1946_v16  ;;  %v3516_v58 = vpop.f32.mrb[95].mxu0  ;;  %3582 = vmatmul.mubr.bf16.gmra.mrb[108].mxu0 %v2212_v63 }
 0x412   : > { %3618 = vmatmul.mubr.bf16.gmra.mrb[108].mxu1 %v2217_v15  ;;  %3585 = vmatprep.mubr.msk.bf16.mxu0 %vm4211_vm0, %v4210_v0 }
 0x413   : > { %v2155_v31 = vadd.f32 %v5281_v30, %v2138_v4  ;;  %v2199_v50 = vadd.f32 %v5286_v8, %v2182_v53  ;;  %3621 = vmatprep.mubr.msk.bf16.mxu1 %vm4211_vm0, %v4210_v0  ;;  %3638 = vmatpush3.bf16.msra.mxu0 %v5225_v41  ;;  %v2163_v13 = vmax.f32 %v2154_v14, 0.0  ;;  %v2207_v60 = vmax.f32 %v2198_v12, 0.0 }
 0x414   : > { %3639 = vmatprep.subr.bf16.mxu0 %v4210_v0  ;;  %3672 = vmatpush3.bf16.msra.mxu1 %v5215_v51 }
 0x415   : > { %v2164_v18 = vmax.f32 %v2155_v31, 0.0  ;;  %v2208_v9 = vmax.f32 %v2199_v50, 0.0  ;;  %3673 = vmatprep.subr.bf16.mxu1 %v4210_v0 }
 0x416   : > { %v1951_v37 = vpop.f32.mrb[96].mxu0 }
 0x417   : > { %v2139_v1 = vsub.f32 %v5153_v10, %v1951_v37  ;;  %v2183_v29 = vsub.f32 %v5553_v23, %v1951_v37  ;;  %v3519_v42 = vpop.f32.mrb[97].mxu0  ;;  %v2213_v24 = vpack.c.bf16 %v2164_v18, %v2163_v13  ;;  %v2218_v41 = vpack.c.bf16 %v2208_v9, %v2207_v60  ;;  %3640 = vmatpush3.bf16.msra.mxu0 %v5231_v56 }
 0x418   : > { %v1954_v20 = vpop.f32.mrb[98].mxu0  ;;  %3641 = vmatprep.subr.bf16.mxu0 %v4210_v0  ;;  %3674 = vmatpush3.bf16.msra.mxu1 %v5227_v5 }
 0x419   : > { %v2156_v51 = vadd.f32 %v5281_v30, %v2139_v1  ;;  %v2200_v33 = vadd.f32 %v5286_v8, %v2183_v29  ;;  %3586 = vmatmul.mubr.bf16.gmra.mrb[112].mxu0 %v2213_v24  ;;  %v3520_v11 = vpop.f32.mrb[99].mxu0  ;;  %3675 = vmatprep.subr.bf16.mxu1 %v4210_v0 }
 0x41a   : > { %3622 = vmatmul.mubr.bf16.gmra.mrb[112].mxu1 %v2218_v41  ;;  %3589 = vmatprep.mubr.msk.bf16.mxu0 %vm4211_vm0, %v4210_v0 }
 0x41b   : > { %v2165_v10 = vmax.f32 %v2156_v51, 0.0  ;;  %3625 = vmatprep.mubr.msk.bf16.mxu1 %vm4211_vm0, %v4210_v0  ;;  %3642 = vmatpush3.bf16.msra.mxu0 %v5241_v59  ;;  %v2209_v52 = vmax.f32 %v2200_v33, 0.0 }
 0x41c   : > { %3643 = vmatprep.subr.bf16.mxu0 %v4210_v0  ;;  %3676 = vmatpush3.bf16.msra.mxu1 %v5233_v6 }
 0x41d   : > { %3677 = vmatprep.subr.bf16.mxu1 %v4210_v0  ;;  %v2214_v5 = vpack.c.bf16 %v2165_v10, %v2165_v10  ;;  %v2219_v56 = vpack.c.bf16 %v2209_v52, %v2209_v52 }
 0x41f   : > { %3644 = vmatpush3.bf16.msra.mxu0 %v5249_v44 }
 0x420   : > { %3678 = vmatpush3.bf16.msra.mxu1 %v5243_v62  ;;  %v5411_v62 = vld [vmem:[%s5549_s15 + $0x1] ss:$0 sm:$0xff] }
 0x421   : > { %3590 = vmatmul.mubr.bf16.gmra.mrb[116].mxu0 %v2214_v5  ;;  %3679 = vmatprep.subr.bf16.mxu1 %v4210_v0 }
 0x422   : > { %3626 = vmatmul.mubr.bf16.gmra.mrb[116].mxu1 %v2219_v56  ;;  %3645 = vmatprep.mubr.msk.bf16.mxu0 %vm4211_vm0, %v4210_v0 }
 0x423   : > { %3681 = vmatprep.mubr.msk.bf16.mxu1 %vm4211_vm0, %v4210_v0 }
 0x424   : > { %3680 = vmatpush3.bf16.msra.mxu1 %v5251_v49 }
 0x429   : > { %3646 = vmatmul.mubr.bf16.vlgmr.msra.gmra.mrb[120].mxu0 %v5300_v17 }
 0x42a   : > { %3649 = vmatprep.mubr.msk.bf16.mxu0 %vm4211_vm0, %v4210_v0 }
 0x431   : > { %3650 = vmatmul.mubr.bf16.gmra.mrb[124].mxu0 %v5327_v26 }
 0x432   : > { %3653 = vmatprep.mubr.msk.bf16.mxu0 %vm4211_vm0, %v4210_v0 }
 0x439   : > { %3654 = vmatmul.mubr.bf16.gmra.mrb[128].mxu0 %v2217_v15 }
 0x43a   : > { %3657 = vmatprep.mubr.msk.bf16.mxu0 %vm4211_vm0, %v4210_v0 }
 0x441   : > { %3658 = vmatmul.mubr.bf16.gmra.mrb[132].mxu0 %v2218_v41 }
 0x442   : > { %3661 = vmatprep.mubr.msk.bf16.mxu0 %vm4211_vm0, %v4210_v0 }
 0x449   : > { %3662 = vmatmul.mubr.bf16.gmra.mrb[136].mxu0 %v2219_v56 }
 0x4d4   : > { %v2319_v6 = vpop.f32.mrb[100].mxu0 }
 0x4d5   : > { %v2456_v59 = vpop.f32.mrb[100].mxu1  ;;  %v3575_v44 = vpop.f32.mrb[101].mxu0 }
 0x4d6   : > { %v2494_v49 = vsub.f32 %v2319_v6, %v2456_v59  ;;  %v3611_v30 = vpop.f32.mrb[101].mxu1  ;;  %v2322_v8 = vpop.f32.mrb[102].mxu0 }
 0x4d7   : > { %v2459_v17 = vpop.f32.mrb[102].mxu1  ;;  %v3576_v2 = vpop.f32.mrb[103].mxu0 }
 0x4d8   : > { %v2511_v21 = vadd.f32 %v5411_v62, %v2494_v49  ;;  %v2495_v22 = vsub.f32 %v2322_v8, %v2459_v17  ;;  %v3612_v35 = vpop.f32.mrb[103].mxu1 }
 0x4da   : > { %2686 = vst [vmem:[%s5059_s28 + $0x8] sm:$0xff] %v2511_v21  ;;  %v2512_v19 = vadd.f32 %v5411_v62, %v2495_v22 }
 0x4dc   : > { %v2520_v40 = vpack.c.bf16 %v2512_v19, %v2511_v21  ;;  %2687 = vst [vmem:[%s5059_s28 + $0x28] sm:$0xff] %v2512_v19  ;;  %v2327_v3 = vpop.f32.mrb[104].mxu0 }
 0x4dd   : > { %v2464_v26 = vpop.f32.mrb[104].mxu1  ;;  %v3579_v34 = vpop.f32.mrb[105].mxu0 }
 0x4de   : > { %v2496_v48 = vsub.f32 %v2327_v3, %v2464_v26  ;;  %v3615_v54 = vpop.f32.mrb[105].mxu1  ;;  %3682 = vmatmul.mubr.bf16.vlgmr.msra.gmra.mrb[120].mxu1 %v2520_v40  ;;  %v2330_v55 = vpop.f32.mrb[106].mxu0 }
 0x4df   : > { %v2467_v57 = vpop.f32.mrb[106].mxu1  ;;  %v3580_v7 = vpop.f32.mrb[107].mxu0  ;;  %3685 = vmatprep.mubr.msk.bf16.mxu1 %vm4211_vm0, %v4210_v0 }
 0x4e0   : > { %v2513_v28 = vadd.f32 %v5411_v62, %v2496_v48  ;;  %v2497_v46 = vsub.f32 %v2330_v55, %v2467_v57  ;;  %v3616_v43 = vpop.f32.mrb[107].mxu1  ;;  %v3001_v7 = vld [vmem:[%s5550_s22 + $0x1] ss:$0 sm:$0xff] }
 0x4e2   : > { %2688 = vst [vmem:[%s5059_s28 + $0x48] sm:$0xff] %v2513_v28  ;;  %v2514_v38 = vadd.f32 %v5411_v62, %v2497_v46 }
 0x4e4   : > { %2689 = vst [vmem:[%s5059_s28 + $0x68] sm:$0xff] %v2514_v38  ;;  %v2335_v39 = vpop.f32.mrb[108].mxu0  ;;  %v2521_v47 = vpack.c.bf16 %v2514_v38, %v2513_v28 }
 0x4e5   : > { %v2472_v36 = vpop.f32.mrb[108].mxu1  ;;  %v3583_v61 = vpop.f32.mrb[109].mxu0 }
 0x4e6   : > { %v2498_v32 = vsub.f32 %v2335_v39, %v2472_v36  ;;  %v3619_v25 = vpop.f32.mrb[109].mxu1  ;;  %3686 = vmatmul.mubr.bf16.gmra.mrb[124].mxu1 %v2521_v47  ;;  %v2338_v45 = vpop.f32.mrb[110].mxu0 }
 0x4e7   : > { %v2475_v63 = vpop.f32.mrb[110].mxu1  ;;  %v3584_v15 = vpop.f32.mrb[111].mxu0  ;;  %3689 = vmatprep.mubr.msk.bf16.mxu1 %vm4211_vm0, %v4210_v0 }
 0x4e8   : > { %v2515_v16 = vadd.f32 %v5411_v62, %v2498_v32  ;;  %v2499_v14 = vsub.f32 %v2338_v45, %v2475_v63  ;;  %v3620_v12 = vpop.f32.mrb[111].mxu1 }
 0x4ea   : > { %2690 = vst [vmem:[%s5059_s28 + $0x88] sm:$0xff] %v2515_v16  ;;  %v2516_v4 = vadd.f32 %v5411_v62, %v2499_v14 }
 0x4ec   : > { %2691 = vst [vmem:[%s5059_s28 + $0xa8] sm:$0xff] %v2516_v4  ;;  %v2343_v27 = vpop.f32.mrb[112].mxu0  ;;  %v2522_v53 = vpack.c.bf16 %v2516_v4, %v2515_v16 }
 0x4ed   : > { %v2480_v58 = vpop.f32.mrb[112].mxu1  ;;  %v3587_v31 = vpop.f32.mrb[113].mxu0 }
 0x4ee   : > { %v2500_v50 = vsub.f32 %v2343_v27, %v2480_v58  ;;  %v3623_v13 = vpop.f32.mrb[113].mxu1  ;;  %3690 = vmatmul.mubr.bf16.gmra.mrb[128].mxu1 %v2522_v53  ;;  %v2346_v60 = vpop.f32.mrb[114].mxu0 }
 0x4ef   : > { %v2483_v18 = vpop.f32.mrb[114].mxu1  ;;  %v3588_v9 = vpop.f32.mrb[115].mxu0  ;;  %3693 = vmatprep.mubr.msk.bf16.mxu1 %vm4211_vm0, %v4210_v0 }
 0x4f0   : > { %v2517_v37 = vadd.f32 %v5411_v62, %v2500_v50  ;;  %v2501_v1 = vsub.f32 %v2346_v60, %v2483_v18  ;;  %v3624_v23 = vpop.f32.mrb[115].mxu1 }
 0x4f2   : > { %2692 = vst [vmem:[%s5059_s28 + $0xc8] sm:$0xff] %v2517_v37  ;;  %v2518_v29 = vadd.f32 %v5411_v62, %v2501_v1 }
 0x4f4   : > { %2693 = vst [vmem:[%s5059_s28 + $0xe8] sm:$0xff] %v2518_v29  ;;  %v2351_v42 = vpop.f32.mrb[116].mxu0  ;;  %v2523_v24 = vpack.c.bf16 %v2518_v29, %v2517_v37 }
 0x4f5   : > { %v2488_v41 = vpop.f32.mrb[116].mxu1  ;;  %v3591_v20 = vpop.f32.mrb[117].mxu0 }
 0x4f6   : > { %v2502_v51 = vsub.f32 %v2351_v42, %v2488_v41  ;;  %v3627_v33 = vpop.f32.mrb[117].mxu1  ;;  %3694 = vmatmul.mubr.bf16.gmra.mrb[132].mxu1 %v2523_v24  ;;  %v2354_v11 = vpop.f32.mrb[118].mxu0 }
 0x4f7   : > { %v2491_v10 = vpop.f32.mrb[118].mxu1  ;;  %v3592_v52 = vpop.f32.mrb[119].mxu0  ;;  %3697 = vmatprep.mubr.msk.bf16.mxu1 %vm4211_vm0, %v4210_v0 }
 0x4f8   : > { %v2519_v5 = vadd.f32 %v5411_v62, %v2502_v51  ;;  %v3628_v56 = vpop.f32.mrb[119].mxu1 }
 0x4fa   : > { %2694 = vst [vmem:[%s5059_s28 + $0x108] sm:$0xff] %v2519_v5  ;;  %v2524_v59 = vpack.c.bf16 %v2519_v5, %v2519_v5 }
 0x4fc   : > { %v2559_v6 = vpop.f32.mrb[120].mxu0 }
 0x4fd   : > { %v3647_v44 = vpop.f32.mrb[121].mxu0 }
 0x4fe   : > { %3698 = vmatmul.mubr.bf16.gmra.mrb[136].mxu1 %v2524_v59  ;;  %v2562_v49 = vpop.f32.mrb[122].mxu0 }
 0x4ff   : > { %v3648_v30 = vpop.f32.mrb[123].mxu0 }
 0x504   : > { %v2567_v8 = vpop.f32.mrb[124].mxu0 }
 0x505   : > { %v3651_v17 = vpop.f32.mrb[125].mxu0 }
 0x506   : > { %v2570_v2 = vpop.f32.mrb[126].mxu0 }
 0x507   : > { %v3652_v21 = vpop.f32.mrb[127].mxu0 }
 0x50c   : > { %v2575_v22 = vpop.f32.mrb[128].mxu0 }
 0x50d   : > { %v3655_v35 = vpop.f32.mrb[129].mxu0 }
 0x50e   : > { %v2578_v19 = vpop.f32.mrb[130].mxu0 }
 0x50f   : > { %v3656_v40 = vpop.f32.mrb[131].mxu0 }
 0x514   : > { %v2583_v3 = vpop.f32.mrb[132].mxu0 }
 0x515   : > { %v3659_v0 = vpop.f32.mrb[133].mxu0 }
 0x516   : > { %v2586_v62 = vpop.f32.mrb[134].mxu0 }
 0x517   : > { %v3660_v26 = vpop.f32.mrb[135].mxu0 }
 0x51c   : > { %v2591_v34 = vpop.f32.mrb[136].mxu0 }
 0x51d   : > { %v3663_v48 = vpop.f32.mrb[137].mxu0 }
 0x51e   : > { %v2594_v54 = vpop.f32.mrb[138].mxu0 }
 0x51f   : > { %v3664_v55 = vpop.f32.mrb[139].mxu0 }
 0x5b1   : > { %v2631_v57 = vpop.f32.mrb[120].mxu1 }
 0x5b2   : > { %v2632_v28 = vadd.f32 %v2631_v57, %v2559_v6  ;;  %v3683_v46 = vpop.f32.mrb[121].mxu1 }
 0x5b3   : > { %v2634_v43 = vpop.f32.mrb[122].mxu1 }
 0x5b4   : > { %v2677_v38 = vadd.f32 %v3001_v7, %v2632_v28  ;;  %v2635_v39 = vadd.f32 %v2634_v43, %v2562_v49  ;;  %v3684_v47 = vpop.f32.mrb[123].mxu1 }
 0x5b6   : > { %2695 = vst [vmem:[%s5059_s28 + $0x18] sm:$0xff] %v2677_v38  ;;  %v2678_v36 = vadd.f32 %v3001_v7, %v2635_v39 }
 0x5b8   : > { %2696 = vst [vmem:[%s5059_s28 + $0x38] sm:$0xff] %v2678_v36 }
 0x5b9   : > { %v2639_v61 = vpop.f32.mrb[124].mxu1 }
 0x5ba   : > { %v2640_v32 = vadd.f32 %v2639_v61, %v2567_v8  ;;  %v3687_v25 = vpop.f32.mrb[125].mxu1 }
 0x5bb   : > { %v2642_v45 = vpop.f32.mrb[126].mxu1 }
 0x5bc   : > { %v2679_v63 = vadd.f32 %v3001_v7, %v2640_v32  ;;  %v2643_v15 = vadd.f32 %v2642_v45, %v2570_v2  ;;  %v3688_v16 = vpop.f32.mrb[127].mxu1 }
 0x5be   : > { %2697 = vst [vmem:[%s5059_s28 + $0x58] sm:$0xff] %v2679_v63  ;;  %v2680_v14 = vadd.f32 %v3001_v7, %v2643_v15 }
 0x5c0   : > { %2698 = vst [vmem:[%s5059_s28 + $0x78] sm:$0xff] %v2680_v14 }
 0x5c1   : > { %v2647_v12 = vpop.f32.mrb[128].mxu1 }
 0x5c2   : > { %v2648_v4 = vadd.f32 %v2647_v12, %v2575_v22  ;;  %v3691_v27 = vpop.f32.mrb[129].mxu1 }
 0x5c3   : > { %v2650_v53 = vpop.f32.mrb[130].mxu1 }
 0x5c4   : > { %v2681_v58 = vadd.f32 %v3001_v7, %v2648_v4  ;;  %v2651_v31 = vadd.f32 %v2650_v53, %v2578_v19  ;;  %v3692_v50 = vpop.f32.mrb[131].mxu1 }
 0x5c6   : > { %2699 = vst [vmem:[%s5059_s28 + $0x98] sm:$0xff] %v2681_v58  ;;  %v2682_v13 = vadd.f32 %v3001_v7, %v2651_v31 }
 0x5c8   : > { %2700 = vst [vmem:[%s5059_s28 + $0xb8] sm:$0xff] %v2682_v13 }
 0x5c9   : > { %v2655_v60 = vpop.f32.mrb[132].mxu1 }
 0x5ca   : > { %v2656_v18 = vadd.f32 %v2655_v60, %v2583_v3  ;;  %v3695_v9 = vpop.f32.mrb[133].mxu1 }
 0x5cb   : > { %v2658_v37 = vpop.f32.mrb[134].mxu1 }
 0x5cc   : > { %v2683_v1 = vadd.f32 %v3001_v7, %v2656_v18  ;;  %v2659_v23 = vadd.f32 %v2658_v37, %v2586_v62  ;;  %v3696_v29 = vpop.f32.mrb[135].mxu1 }
 0x5ce   : > { %2701 = vst [vmem:[%s5059_s28 + $0xd8] sm:$0xff] %v2683_v1  ;;  %v2684_v42 = vadd.f32 %v3001_v7, %v2659_v23 }
 0x5d0   : > { %2702 = vst [vmem:[%s5059_s28 + $0xf8] sm:$0xff] %v2684_v42 }
 0x5d1   : > { %v2663_v24 = vpop.f32.mrb[136].mxu1 }
 0x5d2   : > { %v2664_v41 = vadd.f32 %v2663_v24, %v2591_v34  ;;  %v3699_v20 = vpop.f32.mrb[137].mxu1 }
 0x5d3   : > { %v2666_v51 = vpop.f32.mrb[138].mxu1 }
 0x5d4   : > { %v2685_v33 = vadd.f32 %v3001_v7, %v2664_v41  ;;  %v3700_v11 = vpop.f32.mrb[139].mxu1 }
 0x5d6   : > { %2703 = vst [vmem:[%s5059_s28 + $0x118] sm:$0xff] %v2685_v33 }
 0x5d7   : > { %4128 = shalt.err (!%p4125_p7)
}
 0x5d8   : > { %s4129_s28 = scalar_lea.hbm %s5455_s3, 4608  ;;  %s4133_s21 = scalar_lea.hbm %s5554_s11, 18432 }
 0x5d9   : > { %p4130_p11 = scmp.ne.s32.totalorder %s5455_s3, %s4129_s28  ;;  %p4134_p1 = scmp.lt.u32.totalorder %s5455_s3, %s5554_s11 }
 0x5da   : > { %p4135_p13 = scmp.lt.u32.totalorder %s4133_s21, %s4129_s28  ;;  %p4137_p6 = scmp.lt.u32.totalorder %s4129_s28, %s5455_s3 }
 0x5db   : > { %p4131_p3 = pnand %p4130_p11, %p5555_p2 }
 0x5dc   : > { %p4136_p0 = por %p4135_p13, %p4134_p1 }
 0x5dd   : > { %p4132_p12 = pneg %p4131_p3 }
 0x5de   : > { %p4138_p5 = por %p4137_p6, %p4136_p0 }
 0x5e0   : > { %p4139_p10 = pnand %p4138_p5, %p4132_p12 }
 0x5e2   : > { %4142 = shalt.err (!%p4139_p10)
}
 0x5e3   : > { %s4213_s26 = smov 512   ;;  %s4214_s14 = smov 32  }
 0x5e4   : > { %3729 = dma.vmem_to_hbm [thread:$0]  (%p5555_p2), %s5457_s9, 4608, %s5455_s3, %s2705_s23, %s4213_s26, %s4213_s26, %s4214_s14  }
 0x5e5 PF: > { %p3769_p4 = scmp.ge.s32.totalorder %s4197_s20, 2  ;;  %s2734_s29 = sand.u32 1, %s4185_s17  }
 0x5e6   : > { %p5556_p8 = scmp.ne.s32.totalorder %s5538_s13, 0  ;;  %s2735_s27 = scalar_lea.sflag [#allocation4], %s2734_s29 }
 0x5e8   : > { %p3755_p9 = pnand %p3769_p4, %p5556_p8 }
 0x5ea   : > { %4180 = dma.done.wait (!%p3755_p9), %s2735_s27, 4608  }
 0x5eb   : > { %4182 = vsyncadd (!%p3755_p9), %s2735_s27, 4294962688  ;;  %p29_p7 = scmp.ge.s32.totalorder %s4447_s16, 6   ;;  %s5557_s17 = smov %s4189_s18 }
 0x5ec   : > { %s5558_s18 = smov %s4193_s19  ;;  %s5559_s19 = smov %s4459_s10 }
 0x5ed   : > { %s5560_s20 = smov %s4447_s16  ;;  %31 = sbr.rel (!%p29_p7) target bundleno = 18 (0x12), region = 151 }
 0x5f4   :  { %2740 = vsyncpa [#allocation3], 1 }
 0x5f5   :  { %2742 = vsyncpa [#allocation3 + $0x1], 1 }
 0x5f6   :  { %2743 = vsyncpa [#allocation6], 1 }
 0x5f7   :  { %2745 = vsyncpa [#allocation6 + $0x1], 1 }
 0x5f8   :  { %2746 = vsyncpa [#allocation9], 1 }
 0x5f9   :  { %2747 = vsyncpa [#allocation12], 1 }
 0x5fa   :  { %2748 = vsyncpa [#allocation4], 1 }
 0x5fb   :  { %2750 = vsyncpa [#allocation4 + $0x1], 1 }

</bundles_post_ra>
